<compile_context>
chip_gen: v7x
topology: tpu7x:2x2x1
jax: 0.10.0
libtpu: 0.0.40
codegen_flags: <defaults>
</compile_context>

<pallas_src>
import numpy as np
import jax
import jax.numpy as jnp
from jax import lax
from jax.experimental import pallas as pl
from jax.experimental.pallas import tpu as pltpu


def _disc_kernel(x_ref,                            # (S*Bt, C)   time-major batch chunk
                 wih0_ref, whh0_ref, b0_ref,       # layer-0 fused-gate LSTM params
                 wih1_ref, whh1_ref, b1_ref,       # layer-1 fused-gate LSTM params
                 fc1w_ref, fc1b_ref,               # fc_1
                 fcow_ref, fcob_ref,               # fc_out
                 out_ref,                          # (S*Bt, 2)
                 hn_ref, cn_ref,                   # (n_layers*Bt, H)
                 gates_ref, h0buf_ref, h1buf_ref): # VMEM scratch
    SB = out_ref.shape[0]
    H = hn_ref.shape[1]
    Bt = hn_ref.shape[0] // 2            # n_layers == 2
    S = SB // Bt

    def run_layer(x_all, wih_ref, whh_ref, b_ref, hbuf_ref, layer_idx):
        # (1) hoisted input projection + pre-summed bias for ALL timesteps:
        #     one lane-dense (S*Bt, 4H) matmul instead of 4*S tiny matmuls in the loop.
        gates_ref[...] = (jnp.dot(x_all, wih_ref[...],
                                  preferred_element_type=jnp.float32) + b_ref[...])
        whh = whh_ref[...]                               # hoist recurrent weight load

        def step(r, carry):
            h, c = carry
            # (2) single fused-gate recurrent matmul: (Bt, H) @ (H, 4H)
            g = gates_ref[pl.ds(r, Bt), :] + jnp.dot(
                h, whh, preferred_element_type=jnp.float32)          # (Bt, 4H)
            i_g = jax.nn.sigmoid(g[:, 0 * H:1 * H])                  # PyTorch order i,f,g,o
            f_g = jax.nn.sigmoid(g[:, 1 * H:2 * H])
            g_g = jnp.tanh(g[:, 2 * H:3 * H])
            o_g = jax.nn.sigmoid(g[:, 3 * H:4 * H])
            c_new = f_g * c + i_g * g_g
            h_new = o_g * jnp.tanh(c_new)
            hbuf_ref[pl.ds(r, Bt), :] = h_new                        # full (Bt, H) rows
            return h_new, c_new

        h = jnp.zeros((Bt, H), jnp.float32)
        c = jnp.zeros((Bt, H), jnp.float32)
        if S <= 64:
            # (3) full trace-time unroll: straight-line code, static addressing.
            for t in range(S):
                h, c = step(t * Bt, (h, c))
        else:
            h, c = lax.fori_loop(
                0, S, lambda t, carry: step(pl.multiple_of(t * Bt, Bt), carry),
                (h, c), unroll=8)

        hn_ref[pl.ds(layer_idx * Bt, Bt), :] = h
        cn_ref[pl.ds(layer_idx * Bt, Bt), :] = c

    # LSTM layer 0 (reads x), layer 1 (reads layer-0 hidden states, fully available).
    run_layer(x_ref[...], wih0_ref, whh0_ref, b0_ref, h0buf_ref, 0)
    run_layer(h0buf_ref[...], wih1_ref, whh1_ref, b1_ref, h1buf_ref, 1)

    # fc_1 + ReLU, fc_out — batched over all (s, b) rows in two matmuls.
    h_all = h1buf_ref[...]                                           # (S*Bt, H)
    y1 = jnp.maximum(jnp.dot(h_all, fc1w_ref[...],
                             preferred_element_type=jnp.float32) + fc1b_ref[...], 0.0)
    z = (jnp.dot(y1, fcow_ref[...], preferred_element_type=jnp.float32)
         + fcob_ref[...])                                            # (S*Bt, 2)

    # LogSoftmax over dim=1 of the (B, S, 2) PyTorch output == the SEQUENCE axis.
    # Rows of z are (s, b)-ordered: row = s*Bt + b. Segment-reduce over s (fixed b, class)
    # with a one-hot selection matmul; a global max is a valid (and here safe) stabilizer.
    m = jnp.max(z)
    e = jnp.exp(z - m)                                               # (S*Bt, 2)
    eye = (lax.broadcasted_iota(jnp.int32, (Bt, Bt), 0)
           == lax.broadcasted_iota(jnp.int32, (Bt, Bt), 1)).astype(jnp.float32)
    sel = jnp.tile(eye, (1, S))                                      # (Bt, S*Bt)
    colsum = jnp.dot(sel, e, preferred_element_type=jnp.float32)     # (Bt, 2)
    lse = m + jnp.log(colsum)                                        # (Bt, 2)
    out_ref[...] = z - jnp.tile(lse, (S, 1))


def complex_discriminator_forward(x, params, seq_length=None, b_tile=8):
    """x: (B, S, C) float32 (batch_first). Returns (out (B, S, 2), (h_n, c_n))."""
    del seq_length  # reshape(-1, seq_length, H) is the identity for batch_first unidirectional
    # TODO(synk): external initial hidden state `h` is not supported (default zero state only).
    B, S, C = x.shape
    H = params["whh0"].shape[0]
    n_layers = 2
    Bt = b_tile
    n_chunks = -(-B // Bt)
    Bp = n_chunks * Bt

    # Repack input: time-major, batch-padded, chunked -> (n_chunks, S*Bt, C).
    xt = jnp.transpose(x.astype(jnp.float32), (1, 0, 2))             # (S, B, C)
    xt = jnp.pad(xt, ((0, 0), (0, Bp - B), (0, 0)))                  # (S, Bp, C)
    xt = (xt.reshape(S, n_chunks, Bt, C)
            .transpose(1, 0, 2, 3)
            .reshape(n_chunks, S * Bt, C))

    full = lambda a: pl.BlockSpec(a.shape, lambda g, _n=a.ndim: (0,) * _n)
    in_specs = [
        pl.BlockSpec((None, S * Bt, C), lambda g: (g, 0, 0)),        # x, one batch chunk
        full(params["wih0"]), full(params["whh0"]), full(params["b0"]),
        full(params["wih1"]), full(params["whh1"]), full(params["b1"]),
        full(params["fc1w"]), full(params["fc1b"]),
        full(params["fcow"]), full(params["fcob"]),
    ]
    out_specs = (
        pl.BlockSpec((None, S * Bt, 2), lambda g: (g, 0, 0)),              # out
        pl.BlockSpec((None, n_layers * Bt, H), lambda g: (g, 0, 0)),       # h_n
        pl.BlockSpec((None, n_layers * Bt, H), lambda g: (g, 0, 0)),       # c_n
    )
    out_shape = (
        jax.ShapeDtypeStruct((n_chunks, S * Bt, 2), jnp.float32),
        jax.ShapeDtypeStruct((n_chunks, n_layers * Bt, H), jnp.float32),
        jax.ShapeDtypeStruct((n_chunks, n_layers * Bt, H), jnp.float32),
    )
    scratch_shapes = [
        pltpu.VMEM((S * Bt, 4 * H), jnp.float32),   # fused-gate pre-activations (reused per layer)
        pltpu.VMEM((S * Bt, H), jnp.float32),       # layer-0 hidden states
        pltpu.VMEM((S * Bt, H), jnp.float32),       # layer-1 hidden states
    ]

    out_c, hn_c, cn_c = pl.pallas_call(
        _disc_kernel,
        grid=(n_chunks,),
        in_specs=in_specs,
        out_specs=out_specs,
        out_shape=out_shape,
        scratch_shapes=scratch_shapes,
        compiler_params=pltpu.CompilerParams(dimension_semantics=("parallel",)),
    )(xt, params["wih0"], params["whh0"], params["b0"],
      params["wih1"], params["whh1"], params["b1"],
      params["fc1w"], params["fc1b"], params["fcow"], params["fcob"])

    # Un-chunk / un-pad back to the PyTorch layouts.
    out = (out_c.reshape(n_chunks, S, Bt, 2)
                .transpose(1, 0, 2, 3)
                .reshape(S, Bp, 2)
                .transpose(1, 0, 2)[:B])                             # (B, S, 2)
    h_n = (hn_c.reshape(n_chunks, n_layers, Bt, H)
               .transpose(1, 0, 2, 3)
               .reshape(n_layers, Bp, H)[:, :B])                     # (n_layers, B, H)
    c_n = (cn_c.reshape(n_chunks, n_layers, Bt, H)
               .transpose(1, 0, 2, 3)
               .reshape(n_layers, Bp, H)[:, :B])
    return out, (h_n, c_n)


def init_params(key, in_channels=4, hidden=32):
    """Deterministic params matching the PyTorch module's shapes, fused-gate packed."""
    ks = jax.random.split(key, 12)
    bound = 1.0 / float(hidden) ** 0.5

    def u(k, shape):
        return jax.random.uniform(k, shape, jnp.float32, -bound, bound)

    # LSTM layer 0 (PyTorch layout: (4H, in), gate order i,f,g,o along the 4H axis)
    w_ih0 = u(ks[0], (4 * hidden, in_channels))
    w_hh0 = u(ks[1], (4 * hidden, hidden))
    b_ih0 = u(ks[2], (4 * hidden,))
    b_hh0 = u(ks[3], (4 * hidden,))
    # LSTM layer 1
    w_ih1 = u(ks[4], (4 * hidden, hidden))
    w_hh1 = u(ks[5], (4 * hidden, hidden))
    b_ih1 = u(ks[6], (4 * hidden,))
    b_hh1 = u(ks[7], (4 * hidden,))
    # Linear layers (PyTorch: W is (out, in), y = x @ W.T + b)
    fc1_w = u(ks[8], (hidden, hidden))
    fc1_b = u(ks[9], (hidden,))
    fco_w = u(ks[10], (2, hidden))
    fco_b = u(ks[11], (2,))

    return dict(
        # fused-gate packing: (in_dim, 4H) with gate blocks [i|f|g|o] along the 4H axis
        wih0=w_ih0.T, whh0=w_hh0.T, b0=(b_ih0 + b_hh0).reshape(1, 4 * hidden),
        wih1=w_ih1.T, whh1=w_hh1.T, b1=(b_ih1 + b_hh1).reshape(1, 4 * hidden),
        fc1w=fc1_w.T, fc1b=fc1_b.reshape(1, hidden),
        fcow=fco_w.T, fcob=fco_b.reshape(1, 2),
    )


def _reference_forward_np(x, params):
    """float64 numpy reference (PyTorch semantics) for a correctness sanity check."""
    x = np.asarray(x, np.float64)
    p = {k: np.asarray(v, np.float64) for k, v in params.items()}
    B, S, _ = x.shape
    H = p["whh0"].shape[0]

    def sigmoid(v):
        return 1.0 / (1.0 + np.exp(-v))

    def lstm(xs, wih, whh, b):
        h = np.zeros((B, H)); c = np.zeros((B, H)); outs = []
        for t in range(S):
            g = xs[:, t] @ wih + h @ whh + b[0]
            i = sigmoid(g[:, :H]); f = sigmoid(g[:, H:2 * H])
            gg = np.tanh(g[:, 2 * H:3 * H]); o = sigmoid(g[:, 3 * H:])
            c = f * c + i * gg
            h = o * np.tanh(c)
            outs.append(h)
        return np.stack(outs, axis=1), h, c

    h1, hA, cA = lstm(x, p["wih0"], p["whh0"], p["b0"])
    h2, hB, cB = lstm(h1, p["wih1"], p["whh1"], p["b1"])
    y1 = np.maximum(h2 @ p["fc1w"] + p["fc1b"][0], 0.0)
    z = y1 @ p["fcow"] + p["fcob"][0]                                # (B, S, 2)
    z = z - z.max(axis=1, keepdims=True)
    out = z - np.log(np.exp(z).sum(axis=1, keepdims=True))           # LogSoftmax(dim=1)
    return out, np.stack([hA, hB]), np.stack([cA, cB])


if __name__ == "__main__":
    key = jax.random.PRNGKey(0)
    kx, kp = jax.random.split(key)
    B, S, C, H = 2, 8, 4, 32          # batch, seq, in_channels, hidden_dim (small test sizes)

    x = jax.random.normal(kx, (B, S, C), jnp.float32)
    params = init_params(kp, in_channels=C, hidden=H)

    out, (h_n, c_n) = complex_discriminator_forward(x, params, seq_length=S)
    jax.block_until_ready((out, h_n, c_n))

    assert out.shape == (B, S, 2)
    assert h_n.shape == (2, B, H) and c_n.shape == (2, B, H)

    # Correctness sanity check vs a float64 numpy reference (loose tol: kernel runs f32 MXU).
    ref_out, ref_hn, ref_cn = _reference_forward_np(x, params)
    assert np.allclose(np.asarray(out), ref_out, atol=1e-2, rtol=1e-2)
    assert np.allclose(np.asarray(h_n), ref_hn, atol=1e-2, rtol=1e-2)
    assert np.allclose(np.asarray(c_n), ref_cn, atol=1e-2, rtol=1e-2)
    print("KERNEL_OK")
</pallas_src>

<mosaic_0001>
module attributes {stable_mosaic.version = 11 : i64} {
  func.func @_disc_kernel(%arg0: i32, %arg1: memref<1x64x4xf32, #tpu.memory_space<vmem>>, %arg2: memref<4x128xf32, #tpu.memory_space<vmem>>, %arg3: memref<32x128xf32, #tpu.memory_space<vmem>>, %arg4: memref<1x128xf32, #tpu.memory_space<vmem>>, %arg5: memref<32x128xf32, #tpu.memory_space<vmem>>, %arg6: memref<32x128xf32, #tpu.memory_space<vmem>>, %arg7: memref<1x128xf32, #tpu.memory_space<vmem>>, %arg8: memref<32x32xf32, #tpu.memory_space<vmem>>, %arg9: memref<1x32xf32, #tpu.memory_space<vmem>>, %arg10: memref<32x2xf32, #tpu.memory_space<vmem>>, %arg11: memref<1x2xf32, #tpu.memory_space<vmem>>, %arg12: memref<1x64x2xf32, #tpu.memory_space<vmem>>, %arg13: memref<1x16x32xf32, #tpu.memory_space<vmem>>, %arg14: memref<1x16x32xf32, #tpu.memory_space<vmem>>, %arg15: memref<64x128xf32, #tpu.memory_space<vmem>>, %arg16: memref<64x32xf32, #tpu.memory_space<vmem>>, %arg17: memref<64x32xf32, #tpu.memory_space<vmem>>) attributes {dimension_semantics = [#tpu.dimension_semantics<parallel>], iteration_bounds = array<i64: 1>, scalar_prefetch = 0 : i64, scratch_operands = 3 : i64, tpu.core_type = #tpu.core_type<tc>, window_params = [{transform_indices = @transform_0, window_bounds = array<i64: 1, 64, 4>}, {pipeline_mode = #tpu.pipeline_mode<synchronous>, transform_indices = @transform_1, window_bounds = array<i64: 4, 128>}, {pipeline_mode = #tpu.pipeline_mode<synchronous>, transform_indices = @transform_2, window_bounds = array<i64: 32, 128>}, {pipeline_mode = #tpu.pipeline_mode<synchronous>, transform_indices = @transform_3, window_bounds = array<i64: 1, 128>}, {pipeline_mode = #tpu.pipeline_mode<synchronous>, transform_indices = @transform_4, window_bounds = array<i64: 32, 128>}, {pipeline_mode = #tpu.pipeline_mode<synchronous>, transform_indices = @transform_5, window_bounds = array<i64: 32, 128>}, {pipeline_mode = #tpu.pipeline_mode<synchronous>, transform_indices = @transform_6, window_bounds = array<i64: 1, 128>}, {pipeline_mode = #tpu.pipeline_mode<synchronous>, transform_indices = @transform_7, window_bounds = array<i64: 32, 32>}, {pipeline_mode = #tpu.pipeline_mode<synchronous>, transform_indices = @transform_8, window_bounds = array<i64: 1, 32>}, {pipeline_mode = #tpu.pipeline_mode<synchronous>, transform_indices = @transform_9, window_bounds = array<i64: 32, 2>}, {pipeline_mode = #tpu.pipeline_mode<synchronous>, transform_indices = @transform_10, window_bounds = array<i64: 1, 2>}, {transform_indices = @transform_11, window_bounds = array<i64: 1, 64, 2>}, {transform_indices = @transform_12, window_bounds = array<i64: 1, 16, 32>}, {transform_indices = @transform_13, window_bounds = array<i64: 1, 16, 32>}]} {
    %c0 = arith.constant 0 : index
    %c0_0 = arith.constant 0 : index
    %c0_1 = arith.constant 0 : index
    %0 = vector.load %arg1[%c0, %c0_0, %c0_1] : memref<1x64x4xf32, #tpu.memory_space<vmem>>, vector<1x64x4xf32>
    %1 = vector.shape_cast %0 : vector<1x64x4xf32> to vector<64x4xf32>
    %c0_2 = arith.constant 0 : index
    %c0_3 = arith.constant 0 : index
    %2 = vector.load %arg2[%c0_2, %c0_3] : memref<4x128xf32, #tpu.memory_space<vmem>>, vector<4x128xf32>
    %cst = arith.constant dense<0.000000e+00> : vector<64x128xf32>
    %3 = tpu.matmul %1, %2, %cst {dimension_numbers = #tpu.dot_dimension_numbers<[1], [0], [0], [1], [0, 0, 1, 1], [], []>} : vector<64x4xf32>, vector<4x128xf32>, vector<64x128xf32> -> vector<64x128xf32>
    %c0_4 = arith.constant 0 : index
    %c0_5 = arith.constant 0 : index
    %4 = vector.load %arg4[%c0_4, %c0_5] : memref<1x128xf32, #tpu.memory_space<vmem>>, vector<1x128xf32>
    %5 = vector.broadcast %4 : vector<1x128xf32> to vector<64x128xf32>
    %6 = arith.addf %3, %5 : vector<64x128xf32>
    %c0_6 = arith.constant 0 : index
    %c0_7 = arith.constant 0 : index
    %7 = vector.load %arg15[%c0_6, %c0_7] : memref<64x128xf32, #tpu.memory_space<vmem>>, vector<64x128xf32>
    tpu.vector_store %arg15[%c0_6, %c0_7], %6 {strides = array<i32>} : memref<64x128xf32, #tpu.memory_space<vmem>>, vector<64x128xf32>,
    %c0_8 = arith.constant 0 : index
    %c0_9 = arith.constant 0 : index
    %8 = vector.load %arg3[%c0_8, %c0_9] : memref<32x128xf32, #tpu.memory_space<vmem>>, vector<32x128xf32>
    %cst_10 = arith.constant 0.000000e+00 : f32
    %9 = vector.broadcast %cst_10 : f32 to vector<8x32xf32>
    %cst_11 = arith.constant 0.000000e+00 : f32
    %10 = vector.broadcast %cst_11 : f32 to vector<8x32xf32>
    %c0_12 = arith.constant 0 : index
    %c0_13 = arith.constant 0 : index
    %11 = vector.load %arg15[%c0_12, %c0_13] : memref<64x128xf32, #tpu.memory_space<vmem>>, vector<8x128xf32>
    %cst_14 = arith.constant dense<0.000000e+00> : vector<8x128xf32>
    %12 = tpu.matmul %9, %8, %cst_14 {dimension_numbers = #tpu.dot_dimension_numbers<[1], [0], [0], [1], [0, 0, 1, 1], [], []>} : vector<8x32xf32>, vector<32x128xf32>, vector<8x128xf32> -> vector<8x128xf32>
    %13 = arith.addf %11, %12 : vector<8x128xf32>
    %14 = vector.extract_strided_slice %13 {offsets = [0, 0], sizes = [8, 32], strides = [1, 1]} : vector<8x128xf32> to vector<8x32xf32>
    %15 = arith.negf %14 : vector<8x32xf32>
    %16 = math.exp %15 : vector<8x32xf32>
    %cst_15 = arith.constant 1.000000e+00 : f32
    %17 = vector.broadcast %cst_15 : f32 to vector<8x32xf32>
    %18 = arith.addf %17, %16 : vector<8x32xf32>
    %19 = arith.divf %17, %18 : vector<8x32xf32>
    %20 = vector.extract_strided_slice %13 {offsets = [0, 32], sizes = [8, 32], strides = [1, 1]} : vector<8x128xf32> to vector<8x32xf32>
    %21 = arith.negf %20 : vector<8x32xf32>
    %22 = math.exp %21 : vector<8x32xf32>
    %cst_16 = arith.constant 1.000000e+00 : f32
    %23 = vector.broadcast %cst_16 : f32 to vector<8x32xf32>
    %24 = arith.addf %23, %22 : vector<8x32xf32>
    %25 = arith.divf %23, %24 : vector<8x32xf32>
    %26 = vector.extract_strided_slice %13 {offsets = [0, 64], sizes = [8, 32], strides = [1, 1]} : vector<8x128xf32> to vector<8x32xf32>
    %27 = math.tanh %26 : vector<8x32xf32>
    %28 = vector.extract_strided_slice %13 {offsets = [0, 96], sizes = [8, 32], strides = [1, 1]} : vector<8x128xf32> to vector<8x32xf32>
    %29 = arith.negf %28 : vector<8x32xf32>
    %30 = math.exp %29 : vector<8x32xf32>
    %cst_17 = arith.constant 1.000000e+00 : f32
    %31 = vector.broadcast %cst_17 : f32 to vector<8x32xf32>
    %32 = arith.addf %31, %30 : vector<8x32xf32>
    %33 = arith.divf %31, %32 : vector<8x32xf32>
    %34 = arith.mulf %25, %10 : vector<8x32xf32>
    %35 = arith.mulf %19, %27 : vector<8x32xf32>
    %36 = arith.addf %34, %35 : vector<8x32xf32>
    %37 = math.tanh %36 : vector<8x32xf32>
    %38 = arith.mulf %33, %37 : vector<8x32xf32>
    %c0_18 = arith.constant 0 : index
    %c0_19 = arith.constant 0 : index
    %39 = vector.load %arg16[%c0_18, %c0_19] : memref<64x32xf32, #tpu.memory_space<vmem>>, vector<8x32xf32>
    tpu.vector_store %arg16[%c0_18, %c0_19], %38 {strides = array<i32>} : memref<64x32xf32, #tpu.memory_space<vmem>>, vector<8x32xf32>,
    %c8 = arith.constant 8 : index
    %c0_20 = arith.constant 0 : index
    %40 = vector.load %arg15[%c8, %c0_20] : memref<64x128xf32, #tpu.memory_space<vmem>>, vector<8x128xf32>
    %cst_21 = arith.constant dense<0.000000e+00> : vector<8x128xf32>
    %41 = tpu.matmul %38, %8, %cst_21 {dimension_numbers = #tpu.dot_dimension_numbers<[1], [0], [0], [1], [0, 0, 1, 1], [], []>} : vector<8x32xf32>, vector<32x128xf32>, vector<8x128xf32> -> vector<8x128xf32>
    %42 = arith.addf %40, %41 : vector<8x128xf32>
    %43 = vector.extract_strided_slice %42 {offsets = [0, 0], sizes = [8, 32], strides = [1, 1]} : vector<8x128xf32> to vector<8x32xf32>
    %44 = arith.negf %43 : vector<8x32xf32>
    %45 = math.exp %44 : vector<8x32xf32>
    %cst_22 = arith.constant 1.000000e+00 : f32
    %46 = vector.broadcast %cst_22 : f32 to vector<8x32xf32>
    %47 = arith.addf %46, %45 : vector<8x32xf32>
    %48 = arith.divf %46, %47 : vector<8x32xf32>
    %49 = vector.extract_strided_slice %42 {offsets = [0, 32], sizes = [8, 32], strides = [1, 1]} : vector<8x128xf32> to vector<8x32xf32>
    %50 = arith.negf %49 : vector<8x32xf32>
    %51 = math.exp %50 : vector<8x32xf32>
    %cst_23 = arith.constant 1.000000e+00 : f32
    %52 = vector.broadcast %cst_23 : f32 to vector<8x32xf32>
    %53 = arith.addf %52, %51 : vector<8x32xf32>
    %54 = arith.divf %52, %53 : vector<8x32xf32>
    %55 = vector.extract_strided_slice %42 {offsets = [0, 64], sizes = [8, 32], strides = [1, 1]} : vector<8x128xf32> to vector<8x32xf32>
    %56 = math.tanh %55 : vector<8x32xf32>
    %57 = vector.extract_strided_slice %42 {offsets = [0, 96], sizes = [8, 32], strides = [1, 1]} : vector<8x128xf32> to vector<8x32xf32>
    %58 = arith.negf %57 : vector<8x32xf32>
    %59 = math.exp %58 : vector<8x32xf32>
    %cst_24 = arith.constant 1.000000e+00 : f32
    %60 = vector.broadcast %cst_24 : f32 to vector<8x32xf32>
    %61 = arith.addf %60, %59 : vector<8x32xf32>
    %62 = arith.divf %60, %61 : vector<8x32xf32>
    %63 = arith.mulf %54, %36 : vector<8x32xf32>
    %64 = arith.mulf %48, %56 : vector<8x32xf32>
    %65 = arith.addf %63, %64 : vector<8x32xf32>
    %66 = math.tanh %65 : vector<8x32xf32>
    %67 = arith.mulf %62, %66 : vector<8x32xf32>
    %c8_25 = arith.constant 8 : index
    %c0_26 = arith.constant 0 : index
    %68 = vector.load %arg16[%c8_25, %c0_26] : memref<64x32xf32, #tpu.memory_space<vmem>>, vector<8x32xf32>
    tpu.vector_store %arg16[%c8_25, %c0_26], %67 {strides = array<i32>} : memref<64x32xf32, #tpu.memory_space<vmem>>, vector<8x32xf32>,
    %c16 = arith.constant 16 : index
    %c0_27 = arith.constant 0 : index
    %69 = vector.load %arg15[%c16, %c0_27] : memref<64x128xf32, #tpu.memory_space<vmem>>, vector<8x128xf32>
    %cst_28 = arith.constant dense<0.000000e+00> : vector<8x128xf32>
    %70 = tpu.matmul %67, %8, %cst_28 {dimension_numbers = #tpu.dot_dimension_numbers<[1], [0], [0], [1], [0, 0, 1, 1], [], []>} : vector<8x32xf32>, vector<32x128xf32>, vector<8x128xf32> -> vector<8x128xf32>
    %71 = arith.addf %69, %70 : vector<8x128xf32>
    %72 = vector.extract_strided_slice %71 {offsets = [0, 0], sizes = [8, 32], strides = [1, 1]} : vector<8x128xf32> to vector<8x32xf32>
    %73 = arith.negf %72 : vector<8x32xf32>
    %74 = math.exp %73 : vector<8x32xf32>
    %cst_29 = arith.constant 1.000000e+00 : f32
    %75 = vector.broadcast %cst_29 : f32 to vector<8x32xf32>
    %76 = arith.addf %75, %74 : vector<8x32xf32>
    %77 = arith.divf %75, %76 : vector<8x32xf32>
    %78 = vector.extract_strided_slice %71 {offsets = [0, 32], sizes = [8, 32], strides = [1, 1]} : vector<8x128xf32> to vector<8x32xf32>
    %79 = arith.negf %78 : vector<8x32xf32>
    %80 = math.exp %79 : vector<8x32xf32>
    %cst_30 = arith.constant 1.000000e+00 : f32
    %81 = vector.broadcast %cst_30 : f32 to vector<8x32xf32>
    %82 = arith.addf %81, %80 : vector<8x32xf32>
    %83 = arith.divf %81, %82 : vector<8x32xf32>
    %84 = vector.extract_strided_slice %71 {offsets = [0, 64], sizes = [8, 32], strides = [1, 1]} : vector<8x128xf32> to vector<8x32xf32>
    %85 = math.tanh %84 : vector<8x32xf32>
    %86 = vector.extract_strided_slice %71 {offsets = [0, 96], sizes = [8, 32], strides = [1, 1]} : vector<8x128xf32> to vector<8x32xf32>
    %87 = arith.negf %86 : vector<8x32xf32>
    %88 = math.exp %87 : vector<8x32xf32>
    %cst_31 = arith.constant 1.000000e+00 : f32
    %89 = vector.broadcast %cst_31 : f32 to vector<8x32xf32>
    %90 = arith.addf %89, %88 : vector<8x32xf32>
    %91 = arith.divf %89, %90 : vector<8x32xf32>
    %92 = arith.mulf %83, %65 : vector<8x32xf32>
    %93 = arith.mulf %77, %85 : vector<8x32xf32>
    %94 = arith.addf %92, %93 : vector<8x32xf32>
    %95 = math.tanh %94 : vector<8x32xf32>
    %96 = arith.mulf %91, %95 : vector<8x32xf32>
    %c16_32 = arith.constant 16 : index
    %c0_33 = arith.constant 0 : index
    %97 = vector.load %arg16[%c16_32, %c0_33] : memref<64x32xf32, #tpu.memory_space<vmem>>, vector<8x32xf32>
    tpu.vector_store %arg16[%c16_32, %c0_33], %96 {strides = array<i32>} : memref<64x32xf32, #tpu.memory_space<vmem>>, vector<8x32xf32>,
    %c24 = arith.constant 24 : index
    %c0_34 = arith.constant 0 : index
    %98 = vector.load %arg15[%c24, %c0_34] : memref<64x128xf32, #tpu.memory_space<vmem>>, vector<8x128xf32>
    %cst_35 = arith.constant dense<0.000000e+00> : vector<8x128xf32>
    %99 = tpu.matmul %96, %8, %cst_35 {dimension_numbers = #tpu.dot_dimension_numbers<[1], [0], [0], [1], [0, 0, 1, 1], [], []>} : vector<8x32xf32>, vector<32x128xf32>, vector<8x128xf32> -> vector<8x128xf32>
    %100 = arith.addf %98, %99 : vector<8x128xf32>
    %101 = vector.extract_strided_slice %100 {offsets = [0, 0], sizes = [8, 32], strides = [1, 1]} : vector<8x128xf32> to vector<8x32xf32>
    %102 = arith.negf %101 : vector<8x32xf32>
    %103 = math.exp %102 : vector<8x32xf32>
    %cst_36 = arith.constant 1.000000e+00 : f32
    %104 = vector.broadcast %cst_36 : f32 to vector<8x32xf32>
    %105 = arith.addf %104, %103 : vector<8x32xf32>
    %106 = arith.divf %104, %105 : vector<8x32xf32>
    %107 = vector.extract_strided_slice %100 {offsets = [0, 32], sizes = [8, 32], strides = [1, 1]} : vector<8x128xf32> to vector<8x32xf32>
    %108 = arith.negf %107 : vector<8x32xf32>
    %109 = math.exp %108 : vector<8x32xf32>
    %cst_37 = arith.constant 1.000000e+00 : f32
    %110 = vector.broadcast %cst_37 : f32 to vector<8x32xf32>
    %111 = arith.addf %110, %109 : vector<8x32xf32>
    %112 = arith.divf %110, %111 : vector<8x32xf32>
    %113 = vector.extract_strided_slice %100 {offsets = [0, 64], sizes = [8, 32], strides = [1, 1]} : vector<8x128xf32> to vector<8x32xf32>
    %114 = math.tanh %113 : vector<8x32xf32>
    %115 = vector.extract_strided_slice %100 {offsets = [0, 96], sizes = [8, 32], strides = [1, 1]} : vector<8x128xf32> to vector<8x32xf32>
    %116 = arith.negf %115 : vector<8x32xf32>
    %117 = math.exp %116 : vector<8x32xf32>
    %cst_38 = arith.constant 1.000000e+00 : f32
    %118 = vector.broadcast %cst_38 : f32 to vector<8x32xf32>
    %119 = arith.addf %118, %117 : vector<8x32xf32>
    %120 = arith.divf %118, %119 : vector<8x32xf32>
    %121 = arith.mulf %112, %94 : vector<8x32xf32>
    %122 = arith.mulf %106, %114 : vector<8x32xf32>
    %123 = arith.addf %121, %122 : vector<8x32xf32>
    %124 = math.tanh %123 : vector<8x32xf32>
    %125 = arith.mulf %120, %124 : vector<8x32xf32>
    %c24_39 = arith.constant 24 : index
    %c0_40 = arith.constant 0 : index
    %126 = vector.load %arg16[%c24_39, %c0_40] : memref<64x32xf32, #tpu.memory_space<vmem>>, vector<8x32xf32>
    tpu.vector_store %arg16[%c24_39, %c0_40], %125 {strides = array<i32>} : memref<64x32xf32, #tpu.memory_space<vmem>>, vector<8x32xf32>,
    %c32 = arith.constant 32 : index
    %c0_41 = arith.constant 0 : index
    %127 = vector.load %arg15[%c32, %c0_41] : memref<64x128xf32, #tpu.memory_space<vmem>>, vector<8x128xf32>
    %cst_42 = arith.constant dense<0.000000e+00> : vector<8x128xf32>
    %128 = tpu.matmul %125, %8, %cst_42 {dimension_numbers = #tpu.dot_dimension_numbers<[1], [0], [0], [1], [0, 0, 1, 1], [], []>} : vector<8x32xf32>, vector<32x128xf32>, vector<8x128xf32> -> vector<8x128xf32>
    %129 = arith.addf %127, %128 : vector<8x128xf32>
    %130 = vector.extract_strided_slice %129 {offsets = [0, 0], sizes = [8, 32], strides = [1, 1]} : vector<8x128xf32> to vector<8x32xf32>
    %131 = arith.negf %130 : vector<8x32xf32>
    %132 = math.exp %131 : vector<8x32xf32>
    %cst_43 = arith.constant 1.000000e+00 : f32
    %133 = vector.broadcast %cst_43 : f32 to vector<8x32xf32>
    %134 = arith.addf %133, %132 : vector<8x32xf32>
    %135 = arith.divf %133, %134 : vector<8x32xf32>
    %136 = vector.extract_strided_slice %129 {offsets = [0, 32], sizes = [8, 32], strides = [1, 1]} : vector<8x128xf32> to vector<8x32xf32>
    %137 = arith.negf %136 : vector<8x32xf32>
    %138 = math.exp %137 : vector<8x32xf32>
    %cst_44 = arith.constant 1.000000e+00 : f32
    %139 = vector.broadcast %cst_44 : f32 to vector<8x32xf32>
    %140 = arith.addf %139, %138 : vector<8x32xf32>
    %141 = arith.divf %139, %140 : vector<8x32xf32>
    %142 = vector.extract_strided_slice %129 {offsets = [0, 64], sizes = [8, 32], strides = [1, 1]} : vector<8x128xf32> to vector<8x32xf32>
    %143 = math.tanh %142 : vector<8x32xf32>
    %144 = vector.extract_strided_slice %129 {offsets = [0, 96], sizes = [8, 32], strides = [1, 1]} : vector<8x128xf32> to vector<8x32xf32>
    %145 = arith.negf %144 : vector<8x32xf32>
    %146 = math.exp %145 : vector<8x32xf32>
    %cst_45 = arith.constant 1.000000e+00 : f32
    %147 = vector.broadcast %cst_45 : f32 to vector<8x32xf32>
    %148 = arith.addf %147, %146 : vector<8x32xf32>
    %149 = arith.divf %147, %148 : vector<8x32xf32>
    %150 = arith.mulf %141, %123 : vector<8x32xf32>
    %151 = arith.mulf %135, %143 : vector<8x32xf32>
    %152 = arith.addf %150, %151 : vector<8x32xf32>
    %153 = math.tanh %152 : vector<8x32xf32>
    %154 = arith.mulf %149, %153 : vector<8x32xf32>
    %c32_46 = arith.constant 32 : index
    %c0_47 = arith.constant 0 : index
    %155 = vector.load %arg16[%c32_46, %c0_47] : memref<64x32xf32, #tpu.memory_space<vmem>>, vector<8x32xf32>
    tpu.vector_store %arg16[%c32_46, %c0_47], %154 {strides = array<i32>} : memref<64x32xf32, #tpu.memory_space<vmem>>, vector<8x32xf32>,
    %c40 = arith.constant 40 : index
    %c0_48 = arith.constant 0 : index
    %156 = vector.load %arg15[%c40, %c0_48] : memref<64x128xf32, #tpu.memory_space<vmem>>, vector<8x128xf32>
    %cst_49 = arith.constant dense<0.000000e+00> : vector<8x128xf32>
    %157 = tpu.matmul %154, %8, %cst_49 {dimension_numbers = #tpu.dot_dimension_numbers<[1], [0], [0], [1], [0, 0, 1, 1], [], []>} : vector<8x32xf32>, vector<32x128xf32>, vector<8x128xf32> -> vector<8x128xf32>
    %158 = arith.addf %156, %157 : vector<8x128xf32>
    %159 = vector.extract_strided_slice %158 {offsets = [0, 0], sizes = [8, 32], strides = [1, 1]} : vector<8x128xf32> to vector<8x32xf32>
    %160 = arith.negf %159 : vector<8x32xf32>
    %161 = math.exp %160 : vector<8x32xf32>
    %cst_50 = arith.constant 1.000000e+00 : f32
    %162 = vector.broadcast %cst_50 : f32 to vector<8x32xf32>
    %163 = arith.addf %162, %161 : vector<8x32xf32>
    %164 = arith.divf %162, %163 : vector<8x32xf32>
    %165 = vector.extract_strided_slice %158 {offsets = [0, 32], sizes = [8, 32], strides = [1, 1]} : vector<8x128xf32> to vector<8x32xf32>
    %166 = arith.negf %165 : vector<8x32xf32>
    %167 = math.exp %166 : vector<8x32xf32>
    %cst_51 = arith.constant 1.000000e+00 : f32
    %168 = vector.broadcast %cst_51 : f32 to vector<8x32xf32>
    %169 = arith.addf %168, %167 : vector<8x32xf32>
    %170 = arith.divf %168, %169 : vector<8x32xf32>
    %171 = vector.extract_strided_slice %158 {offsets = [0, 64], sizes = [8, 32], strides = [1, 1]} : vector<8x128xf32> to vector<8x32xf32>
    %172 = math.tanh %171 : vector<8x32xf32>
    %173 = vector.extract_strided_slice %158 {offsets = [0, 96], sizes = [8, 32], strides = [1, 1]} : vector<8x128xf32> to vector<8x32xf32>
    %174 = arith.negf %173 : vector<8x32xf32>
    %175 = math.exp %174 : vector<8x32xf32>
    %cst_52 = arith.constant 1.000000e+00 : f32
    %176 = vector.broadcast %cst_52 : f32 to vector<8x32xf32>
    %177 = arith.addf %176, %175 : vector<8x32xf32>
    %178 = arith.divf %176, %177 : vector<8x32xf32>
    %179 = arith.mulf %170, %152 : vector<8x32xf32>
    %180 = arith.mulf %164, %172 : vector<8x32xf32>
    %181 = arith.addf %179, %180 : vector<8x32xf32>
    %182 = math.tanh %181 : vector<8x32xf32>
    %183 = arith.mulf %178, %182 : vector<8x32xf32>
    %c40_53 = arith.constant 40 : index
    %c0_54 = arith.constant 0 : index
    %184 = vector.load %arg16[%c40_53, %c0_54] : memref<64x32xf32, #tpu.memory_space<vmem>>, vector<8x32xf32>
    tpu.vector_store %arg16[%c40_53, %c0_54], %183 {strides = array<i32>} : memref<64x32xf32, #tpu.memory_space<vmem>>, vector<8x32xf32>,
    %c48 = arith.constant 48 : index
    %c0_55 = arith.constant 0 : index
    %185 = vector.load %arg15[%c48, %c0_55] : memref<64x128xf32, #tpu.memory_space<vmem>>, vector<8x128xf32>
    %cst_56 = arith.constant dense<0.000000e+00> : vector<8x128xf32>
    %186 = tpu.matmul %183, %8, %cst_56 {dimension_numbers = #tpu.dot_dimension_numbers<[1], [0], [0], [1], [0, 0, 1, 1], [], []>} : vector<8x32xf32>, vector<32x128xf32>, vector<8x128xf32> -> vector<8x128xf32>
    %187 = arith.addf %185, %186 : vector<8x128xf32>
    %188 = vector.extract_strided_slice %187 {offsets = [0, 0], sizes = [8, 32], strides = [1, 1]} : vector<8x128xf32> to vector<8x32xf32>
    %189 = arith.negf %188 : vector<8x32xf32>
    %190 = math.exp %189 : vector<8x32xf32>
    %cst_57 = arith.constant 1.000000e+00 : f32
    %191 = vector.broadcast %cst_57 : f32 to vector<8x32xf32>
    %192 = arith.addf %191, %190 : vector<8x32xf32>
    %193 = arith.divf %191, %192 : vector<8x32xf32>
    %194 = vector.extract_strided_slice %187 {offsets = [0, 32], sizes = [8, 32], strides = [1, 1]} : vector<8x128xf32> to vector<8x32xf32>
    %195 = arith.negf %194 : vector<8x32xf32>
    %196 = math.exp %195 : vector<8x32xf32>
    %cst_58 = arith.constant 1.000000e+00 : f32
    %197 = vector.broadcast %cst_58 : f32 to vector<8x32xf32>
    %198 = arith.addf %197, %196 : vector<8x32xf32>
    %199 = arith.divf %197, %198 : vector<8x32xf32>
    %200 = vector.extract_strided_slice %187 {offsets = [0, 64], sizes = [8, 32], strides = [1, 1]} : vector<8x128xf32> to vector<8x32xf32>
    %201 = math.tanh %200 : vector<8x32xf32>
    %202 = vector.extract_strided_slice %187 {offsets = [0, 96], sizes = [8, 32], strides = [1, 1]} : vector<8x128xf32> to vector<8x32xf32>
    %203 = arith.negf %202 : vector<8x32xf32>
    %204 = math.exp %203 : vector<8x32xf32>
    %cst_59 = arith.constant 1.000000e+00 : f32
    %205 = vector.broadcast %cst_59 : f32 to vector<8x32xf32>
    %206 = arith.addf %205, %204 : vector<8x32xf32>
    %207 = arith.divf %205, %206 : vector<8x32xf32>
    %208 = arith.mulf %199, %181 : vector<8x32xf32>
    %209 = arith.mulf %193, %201 : vector<8x32xf32>
    %210 = arith.addf %208, %209 : vector<8x32xf32>
    %211 = math.tanh %210 : vector<8x32xf32>
    %212 = arith.mulf %207, %211 : vector<8x32xf32>
    %c48_60 = arith.constant 48 : index
    %c0_61 = arith.constant 0 : index
    %213 = vector.load %arg16[%c48_60, %c0_61] : memref<64x32xf32, #tpu.memory_space<vmem>>, vector<8x32xf32>
    tpu.vector_store %arg16[%c48_60, %c0_61], %212 {strides = array<i32>} : memref<64x32xf32, #tpu.memory_space<vmem>>, vector<8x32xf32>,
    %c56 = arith.constant 56 : index
    %c0_62 = arith.constant 0 : index
    %214 = vector.load %arg15[%c56, %c0_62] : memref<64x128xf32, #tpu.memory_space<vmem>>, vector<8x128xf32>
    %cst_63 = arith.constant dense<0.000000e+00> : vector<8x128xf32>
    %215 = tpu.matmul %212, %8, %cst_63 {dimension_numbers = #tpu.dot_dimension_numbers<[1], [0], [0], [1], [0, 0, 1, 1], [], []>} : vector<8x32xf32>, vector<32x128xf32>, vector<8x128xf32> -> vector<8x128xf32>
    %216 = arith.addf %214, %215 : vector<8x128xf32>
    %217 = vector.extract_strided_slice %216 {offsets = [0, 0], sizes = [8, 32], strides = [1, 1]} : vector<8x128xf32> to vector<8x32xf32>
    %218 = arith.negf %217 : vector<8x32xf32>
    %219 = math.exp %218 : vector<8x32xf32>
    %cst_64 = arith.constant 1.000000e+00 : f32
    %220 = vector.broadcast %cst_64 : f32 to vector<8x32xf32>
    %221 = arith.addf %220, %219 : vector<8x32xf32>
    %222 = arith.divf %220, %221 : vector<8x32xf32>
    %223 = vector.extract_strided_slice %216 {offsets = [0, 32], sizes = [8, 32], strides = [1, 1]} : vector<8x128xf32> to vector<8x32xf32>
    %224 = arith.negf %223 : vector<8x32xf32>
    %225 = math.exp %224 : vector<8x32xf32>
    %cst_65 = arith.constant 1.000000e+00 : f32
    %226 = vector.broadcast %cst_65 : f32 to vector<8x32xf32>
    %227 = arith.addf %226, %225 : vector<8x32xf32>
    %228 = arith.divf %226, %227 : vector<8x32xf32>
    %229 = vector.extract_strided_slice %216 {offsets = [0, 64], sizes = [8, 32], strides = [1, 1]} : vector<8x128xf32> to vector<8x32xf32>
    %230 = math.tanh %229 : vector<8x32xf32>
    %231 = vector.extract_strided_slice %216 {offsets = [0, 96], sizes = [8, 32], strides = [1, 1]} : vector<8x128xf32> to vector<8x32xf32>
    %232 = arith.negf %231 : vector<8x32xf32>
    %233 = math.exp %232 : vector<8x32xf32>
    %cst_66 = arith.constant 1.000000e+00 : f32
    %234 = vector.broadcast %cst_66 : f32 to vector<8x32xf32>
    %235 = arith.addf %234, %233 : vector<8x32xf32>
    %236 = arith.divf %234, %235 : vector<8x32xf32>
    %237 = arith.mulf %228, %210 : vector<8x32xf32>
    %238 = arith.mulf %222, %230 : vector<8x32xf32>
    %239 = arith.addf %237, %238 : vector<8x32xf32>
    %240 = math.tanh %239 : vector<8x32xf32>
    %241 = arith.mulf %236, %240 : vector<8x32xf32>
    %c56_67 = arith.constant 56 : index
    %c0_68 = arith.constant 0 : index
    %242 = vector.load %arg16[%c56_67, %c0_68] : memref<64x32xf32, #tpu.memory_space<vmem>>, vector<8x32xf32>
    tpu.vector_store %arg16[%c56_67, %c0_68], %241 {strides = array<i32>} : memref<64x32xf32, #tpu.memory_space<vmem>>, vector<8x32xf32>,
    %c0_69 = arith.constant 0 : index
    %c0_70 = arith.constant 0 : index
    %c0_71 = arith.constant 0 : index
    %243 = vector.load %arg13[%c0_69, %c0_70, %c0_71] : memref<1x16x32xf32, #tpu.memory_space<vmem>>, vector<1x8x32xf32>
    %244 = vector.shape_cast %243 : vector<1x8x32xf32> to vector<8x32xf32>
    %245 = vector.shape_cast %241 : vector<8x32xf32> to vector<1x8x32xf32>
    tpu.vector_store %arg13[%c0_69, %c0_70, %c0_71], %245 {strides = array<i32>} : memref<1x16x32xf32, #tpu.memory_space<vmem>>, vector<1x8x32xf32>,
    %c0_72 = arith.constant 0 : index
    %c0_73 = arith.constant 0 : index
    %c0_74 = arith.constant 0 : index
    %246 = vector.load %arg14[%c0_72, %c0_73, %c0_74] : memref<1x16x32xf32, #tpu.memory_space<vmem>>, vector<1x8x32xf32>
    %247 = vector.shape_cast %246 : vector<1x8x32xf32> to vector<8x32xf32>
    %248 = vector.shape_cast %239 : vector<8x32xf32> to vector<1x8x32xf32>
    tpu.vector_store %arg14[%c0_72, %c0_73, %c0_74], %248 {strides = array<i32>} : memref<1x16x32xf32, #tpu.memory_space<vmem>>, vector<1x8x32xf32>,
    %c0_75 = arith.constant 0 : index
    %c0_76 = arith.constant 0 : index
    %249 = vector.load %arg16[%c0_75, %c0_76] : memref<64x32xf32, #tpu.memory_space<vmem>>, vector<64x32xf32>
    %c0_77 = arith.constant 0 : index
    %c0_78 = arith.constant 0 : index
    %250 = vector.load %arg5[%c0_77, %c0_78] : memref<32x128xf32, #tpu.memory_space<vmem>>, vector<32x128xf32>
    %cst_79 = arith.constant dense<0.000000e+00> : vector<64x128xf32>
    %251 = tpu.matmul %249, %250, %cst_79 {dimension_numbers = #tpu.dot_dimension_numbers<[1], [0], [0], [1], [0, 0, 1, 1], [], []>} : vector<64x32xf32>, vector<32x128xf32>, vector<64x128xf32> -> vector<64x128xf32>
    %c0_80 = arith.constant 0 : index
    %c0_81 = arith.constant 0 : index
    %252 = vector.load %arg7[%c0_80, %c0_81] : memref<1x128xf32, #tpu.memory_space<vmem>>, vector<1x128xf32>
    %253 = vector.broadcast %252 : vector<1x128xf32> to vector<64x128xf32>
    %254 = arith.addf %251, %253 : vector<64x128xf32>
    %c0_82 = arith.constant 0 : index
    %c0_83 = arith.constant 0 : index
    %255 = vector.load %arg15[%c0_82, %c0_83] : memref<64x128xf32, #tpu.memory_space<vmem>>, vector<64x128xf32>
    tpu.vector_store %arg15[%c0_82, %c0_83], %254 {strides = array<i32>} : memref<64x128xf32, #tpu.memory_space<vmem>>, vector<64x128xf32>,
    %c0_84 = arith.constant 0 : index
    %c0_85 = arith.constant 0 : index
    %256 = vector.load %arg6[%c0_84, %c0_85] : memref<32x128xf32, #tpu.memory_space<vmem>>, vector<32x128xf32>
    %cst_86 = arith.constant 0.000000e+00 : f32
    %257 = vector.broadcast %cst_86 : f32 to vector<8x32xf32>
    %cst_87 = arith.constant 0.000000e+00 : f32
    %258 = vector.broadcast %cst_87 : f32 to vector<8x32xf32>
    %c0_88 = arith.constant 0 : index
    %c0_89 = arith.constant 0 : index
    %259 = vector.load %arg15[%c0_88, %c0_89] : memref<64x128xf32, #tpu.memory_space<vmem>>, vector<8x128xf32>
    %cst_90 = arith.constant dense<0.000000e+00> : vector<8x128xf32>
    %260 = tpu.matmul %257, %256, %cst_90 {dimension_numbers = #tpu.dot_dimension_numbers<[1], [0], [0], [1], [0, 0, 1, 1], [], []>} : vector<8x32xf32>, vector<32x128xf32>, vector<8x128xf32> -> vector<8x128xf32>
    %261 = arith.addf %259, %260 : vector<8x128xf32>
    %262 = vector.extract_strided_slice %261 {offsets = [0, 0], sizes = [8, 32], strides = [1, 1]} : vector<8x128xf32> to vector<8x32xf32>
    %263 = arith.negf %262 : vector<8x32xf32>
    %264 = math.exp %263 : vector<8x32xf32>
    %cst_91 = arith.constant 1.000000e+00 : f32
    %265 = vector.broadcast %cst_91 : f32 to vector<8x32xf32>
    %266 = arith.addf %265, %264 : vector<8x32xf32>
    %267 = arith.divf %265, %266 : vector<8x32xf32>
    %268 = vector.extract_strided_slice %261 {offsets = [0, 32], sizes = [8, 32], strides = [1, 1]} : vector<8x128xf32> to vector<8x32xf32>
    %269 = arith.negf %268 : vector<8x32xf32>
    %270 = math.exp %269 : vector<8x32xf32>
    %cst_92 = arith.constant 1.000000e+00 : f32
    %271 = vector.broadcast %cst_92 : f32 to vector<8x32xf32>
    %272 = arith.addf %271, %270 : vector<8x32xf32>
    %273 = arith.divf %271, %272 : vector<8x32xf32>
    %274 = vector.extract_strided_slice %261 {offsets = [0, 64], sizes = [8, 32], strides = [1, 1]} : vector<8x128xf32> to vector<8x32xf32>
    %275 = math.tanh %274 : vector<8x32xf32>
    %276 = vector.extract_strided_slice %261 {offsets = [0, 96], sizes = [8, 32], strides = [1, 1]} : vector<8x128xf32> to vector<8x32xf32>
    %277 = arith.negf %276 : vector<8x32xf32>
    %278 = math.exp %277 : vector<8x32xf32>
    %cst_93 = arith.constant 1.000000e+00 : f32
    %279 = vector.broadcast %cst_93 : f32 to vector<8x32xf32>
    %280 = arith.addf %279, %278 : vector<8x32xf32>
    %281 = arith.divf %279, %280 : vector<8x32xf32>
    %282 = arith.mulf %273, %258 : vector<8x32xf32>
    %283 = arith.mulf %267, %275 : vector<8x32xf32>
    %284 = arith.addf %282, %283 : vector<8x32xf32>
    %285 = math.tanh %284 : vector<8x32xf32>
    %286 = arith.mulf %281, %285 : vector<8x32xf32>
    %c0_94 = arith.constant 0 : index
    %c0_95 = arith.constant 0 : index
    %287 = vector.load %arg17[%c0_94, %c0_95] : memref<64x32xf32, #tpu.memory_space<vmem>>, vector<8x32xf32>
    tpu.vector_store %arg17[%c0_94, %c0_95], %286 {strides = array<i32>} : memref<64x32xf32, #tpu.memory_space<vmem>>, vector<8x32xf32>,
    %c8_96 = arith.constant 8 : index
    %c0_97 = arith.constant 0 : index
    %288 = vector.load %arg15[%c8_96, %c0_97] : memref<64x128xf32, #tpu.memory_space<vmem>>, vector<8x128xf32>
    %cst_98 = arith.constant dense<0.000000e+00> : vector<8x128xf32>
    %289 = tpu.matmul %286, %256, %cst_98 {dimension_numbers = #tpu.dot_dimension_numbers<[1], [0], [0], [1], [0, 0, 1, 1], [], []>} : vector<8x32xf32>, vector<32x128xf32>, vector<8x128xf32> -> vector<8x128xf32>
    %290 = arith.addf %288, %289 : vector<8x128xf32>
    %291 = vector.extract_strided_slice %290 {offsets = [0, 0], sizes = [8, 32], strides = [1, 1]} : vector<8x128xf32> to vector<8x32xf32>
    %292 = arith.negf %291 : vector<8x32xf32>
    %293 = math.exp %292 : vector<8x32xf32>
    %cst_99 = arith.constant 1.000000e+00 : f32
    %294 = vector.broadcast %cst_99 : f32 to vector<8x32xf32>
    %295 = arith.addf %294, %293 : vector<8x32xf32>
    %296 = arith.divf %294, %295 : vector<8x32xf32>
    %297 = vector.extract_strided_slice %290 {offsets = [0, 32], sizes = [8, 32], strides = [1, 1]} : vector<8x128xf32> to vector<8x32xf32>
    %298 = arith.negf %297 : vector<8x32xf32>
    %299 = math.exp %298 : vector<8x32xf32>
    %cst_100 = arith.constant 1.000000e+00 : f32
    %300 = vector.broadcast %cst_100 : f32 to vector<8x32xf32>
    %301 = arith.addf %300, %299 : vector<8x32xf32>
    %302 = arith.divf %300, %301 : vector<8x32xf32>
    %303 = vector.extract_strided_slice %290 {offsets = [0, 64], sizes = [8, 32], strides = [1, 1]} : vector<8x128xf32> to vector<8x32xf32>
    %304 = math.tanh %303 : vector<8x32xf32>
    %305 = vector.extract_strided_slice %290 {offsets = [0, 96], sizes = [8, 32], strides = [1, 1]} : vector<8x128xf32> to vector<8x32xf32>
    %306 = arith.negf %305 : vector<8x32xf32>
    %307 = math.exp %306 : vector<8x32xf32>
    %cst_101 = arith.constant 1.000000e+00 : f32
    %308 = vector.broadcast %cst_101 : f32 to vector<8x32xf32>
    %309 = arith.addf %308, %307 : vector<8x32xf32>
    %310 = arith.divf %308, %309 : vector<8x32xf32>
    %311 = arith.mulf %302, %284 : vector<8x32xf32>
    %312 = arith.mulf %296, %304 : vector<8x32xf32>
    %313 = arith.addf %311, %312 : vector<8x32xf32>
    %314 = math.tanh %313 : vector<8x32xf32>
    %315 = arith.mulf %310, %314 : vector<8x32xf32>
    %c8_102 = arith.constant 8 : index
    %c0_103 = arith.constant 0 : index
    %316 = vector.load %arg17[%c8_102, %c0_103] : memref<64x32xf32, #tpu.memory_space<vmem>>, vector<8x32xf32>
    tpu.vector_store %arg17[%c8_102, %c0_103], %315 {strides = array<i32>} : memref<64x32xf32, #tpu.memory_space<vmem>>, vector<8x32xf32>,
    %c16_104 = arith.constant 16 : index
    %c0_105 = arith.constant 0 : index
    %317 = vector.load %arg15[%c16_104, %c0_105] : memref<64x128xf32, #tpu.memory_space<vmem>>, vector<8x128xf32>
    %cst_106 = arith.constant dense<0.000000e+00> : vector<8x128xf32>
    %318 = tpu.matmul %315, %256, %cst_106 {dimension_numbers = #tpu.dot_dimension_numbers<[1], [0], [0], [1], [0, 0, 1, 1], [], []>} : vector<8x32xf32>, vector<32x128xf32>, vector<8x128xf32> -> vector<8x128xf32>
    %319 = arith.addf %317, %318 : vector<8x128xf32>
    %320 = vector.extract_strided_slice %319 {offsets = [0, 0], sizes = [8, 32], strides = [1, 1]} : vector<8x128xf32> to vector<8x32xf32>
    %321 = arith.negf %320 : vector<8x32xf32>
    %322 = math.exp %321 : vector<8x32xf32>
    %cst_107 = arith.constant 1.000000e+00 : f32
    %323 = vector.broadcast %cst_107 : f32 to vector<8x32xf32>
    %324 = arith.addf %323, %322 : vector<8x32xf32>
    %325 = arith.divf %323, %324 : vector<8x32xf32>
    %326 = vector.extract_strided_slice %319 {offsets = [0, 32], sizes = [8, 32], strides = [1, 1]} : vector<8x128xf32> to vector<8x32xf32>
    %327 = arith.negf %326 : vector<8x32xf32>
    %328 = math.exp %327 : vector<8x32xf32>
    %cst_108 = arith.constant 1.000000e+00 : f32
    %329 = vector.broadcast %cst_108 : f32 to vector<8x32xf32>
    %330 = arith.addf %329, %328 : vector<8x32xf32>
    %331 = arith.divf %329, %330 : vector<8x32xf32>
    %332 = vector.extract_strided_slice %319 {offsets = [0, 64], sizes = [8, 32], strides = [1, 1]} : vector<8x128xf32> to vector<8x32xf32>
    %333 = math.tanh %332 : vector<8x32xf32>
    %334 = vector.extract_strided_slice %319 {offsets = [0, 96], sizes = [8, 32], strides = [1, 1]} : vector<8x128xf32> to vector<8x32xf32>
    %335 = arith.negf %334 : vector<8x32xf32>
    %336 = math.exp %335 : vector<8x32xf32>
    %cst_109 = arith.constant 1.000000e+00 : f32
    %337 = vector.broadcast %cst_109 : f32 to vector<8x32xf32>
    %338 = arith.addf %337, %336 : vector<8x32xf32>
    %339 = arith.divf %337, %338 : vector<8x32xf32>
    %340 = arith.mulf %331, %313 : vector<8x32xf32>
    %341 = arith.mulf %325, %333 : vector<8x32xf32>
    %342 = arith.addf %340, %341 : vector<8x32xf32>
    %343 = math.tanh %342 : vector<8x32xf32>
    %344 = arith.mulf %339, %343 : vector<8x32xf32>
    %c16_110 = arith.constant 16 : index
    %c0_111 = arith.constant 0 : index
    %345 = vector.load %arg17[%c16_110, %c0_111] : memref<64x32xf32, #tpu.memory_space<vmem>>, vector<8x32xf32>
    tpu.vector_store %arg17[%c16_110, %c0_111], %344 {strides = array<i32>} : memref<64x32xf32, #tpu.memory_space<vmem>>, vector<8x32xf32>,
    %c24_112 = arith.constant 24 : index
    %c0_113 = arith.constant 0 : index
    %346 = vector.load %arg15[%c24_112, %c0_113] : memref<64x128xf32, #tpu.memory_space<vmem>>, vector<8x128xf32>
    %cst_114 = arith.constant dense<0.000000e+00> : vector<8x128xf32>
    %347 = tpu.matmul %344, %256, %cst_114 {dimension_numbers = #tpu.dot_dimension_numbers<[1], [0], [0], [1], [0, 0, 1, 1], [], []>} : vector<8x32xf32>, vector<32x128xf32>, vector<8x128xf32> -> vector<8x128xf32>
    %348 = arith.addf %346, %347 : vector<8x128xf32>
    %349 = vector.extract_strided_slice %348 {offsets = [0, 0], sizes = [8, 32], strides = [1, 1]} : vector<8x128xf32> to vector<8x32xf32>
    %350 = arith.negf %349 : vector<8x32xf32>
    %351 = math.exp %350 : vector<8x32xf32>
    %cst_115 = arith.constant 1.000000e+00 : f32
    %352 = vector.broadcast %cst_115 : f32 to vector<8x32xf32>
    %353 = arith.addf %352, %351 : vector<8x32xf32>
    %354 = arith.divf %352, %353 : vector<8x32xf32>
    %355 = vector.extract_strided_slice %348 {offsets = [0, 32], sizes = [8, 32], strides = [1, 1]} : vector<8x128xf32> to vector<8x32xf32>
    %356 = arith.negf %355 : vector<8x32xf32>
    %357 = math.exp %356 : vector<8x32xf32>
    %cst_116 = arith.constant 1.000000e+00 : f32
    %358 = vector.broadcast %cst_116 : f32 to vector<8x32xf32>
    %359 = arith.addf %358, %357 : vector<8x32xf32>
    %360 = arith.divf %358, %359 : vector<8x32xf32>
    %361 = vector.extract_strided_slice %348 {offsets = [0, 64], sizes = [8, 32], strides = [1, 1]} : vector<8x128xf32> to vector<8x32xf32>
    %362 = math.tanh %361 : vector<8x32xf32>
    %363 = vector.extract_strided_slice %348 {offsets = [0, 96], sizes = [8, 32], strides = [1, 1]} : vector<8x128xf32> to vector<8x32xf32>
    %364 = arith.negf %363 : vector<8x32xf32>
    %365 = math.exp %364 : vector<8x32xf32>
    %cst_117 = arith.constant 1.000000e+00 : f32
    %366 = vector.broadcast %cst_117 : f32 to vector<8x32xf32>
    %367 = arith.addf %366, %365 : vector<8x32xf32>
    %368 = arith.divf %366, %367 : vector<8x32xf32>
    %369 = arith.mulf %360, %342 : vector<8x32xf32>
    %370 = arith.mulf %354, %362 : vector<8x32xf32>
    %371 = arith.addf %369, %370 : vector<8x32xf32>
    %372 = math.tanh %371 : vector<8x32xf32>
    %373 = arith.mulf %368, %372 : vector<8x32xf32>
    %c24_118 = arith.constant 24 : index
    %c0_119 = arith.constant 0 : index
    %374 = vector.load %arg17[%c24_118, %c0_119] : memref<64x32xf32, #tpu.memory_space<vmem>>, vector<8x32xf32>
    tpu.vector_store %arg17[%c24_118, %c0_119], %373 {strides = array<i32>} : memref<64x32xf32, #tpu.memory_space<vmem>>, vector<8x32xf32>,
    %c32_120 = arith.constant 32 : index
    %c0_121 = arith.constant 0 : index
    %375 = vector.load %arg15[%c32_120, %c0_121] : memref<64x128xf32, #tpu.memory_space<vmem>>, vector<8x128xf32>
    %cst_122 = arith.constant dense<0.000000e+00> : vector<8x128xf32>
    %376 = tpu.matmul %373, %256, %cst_122 {dimension_numbers = #tpu.dot_dimension_numbers<[1], [0], [0], [1], [0, 0, 1, 1], [], []>} : vector<8x32xf32>, vector<32x128xf32>, vector<8x128xf32> -> vector<8x128xf32>
    %377 = arith.addf %375, %376 : vector<8x128xf32>
    %378 = vector.extract_strided_slice %377 {offsets = [0, 0], sizes = [8, 32], strides = [1, 1]} : vector<8x128xf32> to vector<8x32xf32>
    %379 = arith.negf %378 : vector<8x32xf32>
    %380 = math.exp %379 : vector<8x32xf32>
    %cst_123 = arith.constant 1.000000e+00 : f32
    %381 = vector.broadcast %cst_123 : f32 to vector<8x32xf32>
    %382 = arith.addf %381, %380 : vector<8x32xf32>
    %383 = arith.divf %381, %382 : vector<8x32xf32>
    %384 = vector.extract_strided_slice %377 {offsets = [0, 32], sizes = [8, 32], strides = [1, 1]} : vector<8x128xf32> to vector<8x32xf32>
    %385 = arith.negf %384 : vector<8x32xf32>
    %386 = math.exp %385 : vector<8x32xf32>
    %cst_124 = arith.constant 1.000000e+00 : f32
    %387 = vector.broadcast %cst_124 : f32 to vector<8x32xf32>
    %388 = arith.addf %387, %386 : vector<8x32xf32>
    %389 = arith.divf %387, %388 : vector<8x32xf32>
    %390 = vector.extract_strided_slice %377 {offsets = [0, 64], sizes = [8, 32], strides = [1, 1]} : vector<8x128xf32> to vector<8x32xf32>
    %391 = math.tanh %390 : vector<8x32xf32>
    %392 = vector.extract_strided_slice %377 {offsets = [0, 96], sizes = [8, 32], strides = [1, 1]} : vector<8x128xf32> to vector<8x32xf32>
    %393 = arith.negf %392 : vector<8x32xf32>
    %394 = math.exp %393 : vector<8x32xf32>
    %cst_125 = arith.constant 1.000000e+00 : f32
    %395 = vector.broadcast %cst_125 : f32 to vector<8x32xf32>
    %396 = arith.addf %395, %394 : vector<8x32xf32>
    %397 = arith.divf %395, %396 : vector<8x32xf32>
    %398 = arith.mulf %389, %371 : vector<8x32xf32>
    %399 = arith.mulf %383, %391 : vector<8x32xf32>
    %400 = arith.addf %398, %399 : vector<8x32xf32>
    %401 = math.tanh %400 : vector<8x32xf32>
    %402 = arith.mulf %397, %401 : vector<8x32xf32>
    %c32_126 = arith.constant 32 : index
    %c0_127 = arith.constant 0 : index
    %403 = vector.load %arg17[%c32_126, %c0_127] : memref<64x32xf32, #tpu.memory_space<vmem>>, vector<8x32xf32>
    tpu.vector_store %arg17[%c32_126, %c0_127], %402 {strides = array<i32>} : memref<64x32xf32, #tpu.memory_space<vmem>>, vector<8x32xf32>,
    %c40_128 = arith.constant 40 : index
    %c0_129 = arith.constant 0 : index
    %404 = vector.load %arg15[%c40_128, %c0_129] : memref<64x128xf32, #tpu.memory_space<vmem>>, vector<8x128xf32>
    %cst_130 = arith.constant dense<0.000000e+00> : vector<8x128xf32>
    %405 = tpu.matmul %402, %256, %cst_130 {dimension_numbers = #tpu.dot_dimension_numbers<[1], [0], [0], [1], [0, 0, 1, 1], [], []>} : vector<8x32xf32>, vector<32x128xf32>, vector<8x128xf32> -> vector<8x128xf32>
    %406 = arith.addf %404, %405 : vector<8x128xf32>
    %407 = vector.extract_strided_slice %406 {offsets = [0, 0], sizes = [8, 32], strides = [1, 1]} : vector<8x128xf32> to vector<8x32xf32>
    %408 = arith.negf %407 : vector<8x32xf32>
    %409 = math.exp %408 : vector<8x32xf32>
    %cst_131 = arith.constant 1.000000e+00 : f32
    %410 = vector.broadcast %cst_131 : f32 to vector<8x32xf32>
    %411 = arith.addf %410, %409 : vector<8x32xf32>
    %412 = arith.divf %410, %411 : vector<8x32xf32>
    %413 = vector.extract_strided_slice %406 {offsets = [0, 32], sizes = [8, 32], strides = [1, 1]} : vector<8x128xf32> to vector<8x32xf32>
    %414 = arith.negf %413 : vector<8x32xf32>
    %415 = math.exp %414 : vector<8x32xf32>
    %cst_132 = arith.constant 1.000000e+00 : f32
    %416 = vector.broadcast %cst_132 : f32 to vector<8x32xf32>
    %417 = arith.addf %416, %415 : vector<8x32xf32>
    %418 = arith.divf %416, %417 : vector<8x32xf32>
    %419 = vector.extract_strided_slice %406 {offsets = [0, 64], sizes = [8, 32], strides = [1, 1]} : vector<8x128xf32> to vector<8x32xf32>
    %420 = math.tanh %419 : vector<8x32xf32>
    %421 = vector.extract_strided_slice %406 {offsets = [0, 96], sizes = [8, 32], strides = [1, 1]} : vector<8x128xf32> to vector<8x32xf32>
    %422 = arith.negf %421 : vector<8x32xf32>
    %423 = math.exp %422 : vector<8x32xf32>
    %cst_133 = arith.constant 1.000000e+00 : f32
    %424 = vector.broadcast %cst_133 : f32 to vector<8x32xf32>
    %425 = arith.addf %424, %423 : vector<8x32xf32>
    %426 = arith.divf %424, %425 : vector<8x32xf32>
    %427 = arith.mulf %418, %400 : vector<8x32xf32>
    %428 = arith.mulf %412, %420 : vector<8x32xf32>
    %429 = arith.addf %427, %428 : vector<8x32xf32>
    %430 = math.tanh %429 : vector<8x32xf32>
    %431 = arith.mulf %426, %430 : vector<8x32xf32>
    %c40_134 = arith.constant 40 : index
    %c0_135 = arith.constant 0 : index
    %432 = vector.load %arg17[%c40_134, %c0_135] : memref<64x32xf32, #tpu.memory_space<vmem>>, vector<8x32xf32>
    tpu.vector_store %arg17[%c40_134, %c0_135], %431 {strides = array<i32>} : memref<64x32xf32, #tpu.memory_space<vmem>>, vector<8x32xf32>,
    %c48_136 = arith.constant 48 : index
    %c0_137 = arith.constant 0 : index
    %433 = vector.load %arg15[%c48_136, %c0_137] : memref<64x128xf32, #tpu.memory_space<vmem>>, vector<8x128xf32>
    %cst_138 = arith.constant dense<0.000000e+00> : vector<8x128xf32>
    %434 = tpu.matmul %431, %256, %cst_138 {dimension_numbers = #tpu.dot_dimension_numbers<[1], [0], [0], [1], [0, 0, 1, 1], [], []>} : vector<8x32xf32>, vector<32x128xf32>, vector<8x128xf32> -> vector<8x128xf32>
    %435 = arith.addf %433, %434 : vector<8x128xf32>
    %436 = vector.extract_strided_slice %435 {offsets = [0, 0], sizes = [8, 32], strides = [1, 1]} : vector<8x128xf32> to vector<8x32xf32>
    %437 = arith.negf %436 : vector<8x32xf32>
    %438 = math.exp %437 : vector<8x32xf32>
    %cst_139 = arith.constant 1.000000e+00 : f32
    %439 = vector.broadcast %cst_139 : f32 to vector<8x32xf32>
    %440 = arith.addf %439, %438 : vector<8x32xf32>
    %441 = arith.divf %439, %440 : vector<8x32xf32>
    %442 = vector.extract_strided_slice %435 {offsets = [0, 32], sizes = [8, 32], strides = [1, 1]} : vector<8x128xf32> to vector<8x32xf32>
    %443 = arith.negf %442 : vector<8x32xf32>
    %444 = math.exp %443 : vector<8x32xf32>
    %cst_140 = arith.constant 1.000000e+00 : f32
    %445 = vector.broadcast %cst_140 : f32 to vector<8x32xf32>
    %446 = arith.addf %445, %444 : vector<8x32xf32>
    %447 = arith.divf %445, %446 : vector<8x32xf32>
    %448 = vector.extract_strided_slice %435 {offsets = [0, 64], sizes = [8, 32], strides = [1, 1]} : vector<8x128xf32> to vector<8x32xf32>
    %449 = math.tanh %448 : vector<8x32xf32>
    %450 = vector.extract_strided_slice %435 {offsets = [0, 96], sizes = [8, 32], strides = [1, 1]} : vector<8x128xf32> to vector<8x32xf32>
    %451 = arith.negf %450 : vector<8x32xf32>
    %452 = math.exp %451 : vector<8x32xf32>
    %cst_141 = arith.constant 1.000000e+00 : f32
    %453 = vector.broadcast %cst_141 : f32 to vector<8x32xf32>
    %454 = arith.addf %453, %452 : vector<8x32xf32>
    %455 = arith.divf %453, %454 : vector<8x32xf32>
    %456 = arith.mulf %447, %429 : vector<8x32xf32>
    %457 = arith.mulf %441, %449 : vector<8x32xf32>
    %458 = arith.addf %456, %457 : vector<8x32xf32>
    %459 = math.tanh %458 : vector<8x32xf32>
    %460 = arith.mulf %455, %459 : vector<8x32xf32>
    %c48_142 = arith.constant 48 : index
    %c0_143 = arith.constant 0 : index
    %461 = vector.load %arg17[%c48_142, %c0_143] : memref<64x32xf32, #tpu.memory_space<vmem>>, vector<8x32xf32>
    tpu.vector_store %arg17[%c48_142, %c0_143], %460 {strides = array<i32>} : memref<64x32xf32, #tpu.memory_space<vmem>>, vector<8x32xf32>,
    %c56_144 = arith.constant 56 : index
    %c0_145 = arith.constant 0 : index
    %462 = vector.load %arg15[%c56_144, %c0_145] : memref<64x128xf32, #tpu.memory_space<vmem>>, vector<8x128xf32>
    %cst_146 = arith.constant dense<0.000000e+00> : vector<8x128xf32>
    %463 = tpu.matmul %460, %256, %cst_146 {dimension_numbers = #tpu.dot_dimension_numbers<[1], [0], [0], [1], [0, 0, 1, 1], [], []>} : vector<8x32xf32>, vector<32x128xf32>, vector<8x128xf32> -> vector<8x128xf32>
    %464 = arith.addf %462, %463 : vector<8x128xf32>
    %465 = vector.extract_strided_slice %464 {offsets = [0, 0], sizes = [8, 32], strides = [1, 1]} : vector<8x128xf32> to vector<8x32xf32>
    %466 = arith.negf %465 : vector<8x32xf32>
    %467 = math.exp %466 : vector<8x32xf32>
    %cst_147 = arith.constant 1.000000e+00 : f32
    %468 = vector.broadcast %cst_147 : f32 to vector<8x32xf32>
    %469 = arith.addf %468, %467 : vector<8x32xf32>
    %470 = arith.divf %468, %469 : vector<8x32xf32>
    %471 = vector.extract_strided_slice %464 {offsets = [0, 32], sizes = [8, 32], strides = [1, 1]} : vector<8x128xf32> to vector<8x32xf32>
    %472 = arith.negf %471 : vector<8x32xf32>
    %473 = math.exp %472 : vector<8x32xf32>
    %cst_148 = arith.constant 1.000000e+00 : f32
    %474 = vector.broadcast %cst_148 : f32 to vector<8x32xf32>
    %475 = arith.addf %474, %473 : vector<8x32xf32>
    %476 = arith.divf %474, %475 : vector<8x32xf32>
    %477 = vector.extract_strided_slice %464 {offsets = [0, 64], sizes = [8, 32], strides = [1, 1]} : vector<8x128xf32> to vector<8x32xf32>
    %478 = math.tanh %477 : vector<8x32xf32>
    %479 = vector.extract_strided_slice %464 {offsets = [0, 96], sizes = [8, 32], strides = [1, 1]} : vector<8x128xf32> to vector<8x32xf32>
    %480 = arith.negf %479 : vector<8x32xf32>
    %481 = math.exp %480 : vector<8x32xf32>
    %cst_149 = arith.constant 1.000000e+00 : f32
    %482 = vector.broadcast %cst_149 : f32 to vector<8x32xf32>
    %483 = arith.addf %482, %481 : vector<8x32xf32>
    %484 = arith.divf %482, %483 : vector<8x32xf32>
    %485 = arith.mulf %476, %458 : vector<8x32xf32>
    %486 = arith.mulf %470, %478 : vector<8x32xf32>
    %487 = arith.addf %485, %486 : vector<8x32xf32>
    %488 = math.tanh %487 : vector<8x32xf32>
    %489 = arith.mulf %484, %488 : vector<8x32xf32>
    %c56_150 = arith.constant 56 : index
    %c0_151 = arith.constant 0 : index
    %490 = vector.load %arg17[%c56_150, %c0_151] : memref<64x32xf32, #tpu.memory_space<vmem>>, vector<8x32xf32>
    tpu.vector_store %arg17[%c56_150, %c0_151], %489 {strides = array<i32>} : memref<64x32xf32, #tpu.memory_space<vmem>>, vector<8x32xf32>,
    %c0_152 = arith.constant 0 : index
    %c8_153 = arith.constant 8 : index
    %c0_154 = arith.constant 0 : index
    %491 = vector.load %arg13[%c0_152, %c8_153, %c0_154] : memref<1x16x32xf32, #tpu.memory_space<vmem>>, vector<1x8x32xf32>
    %492 = vector.shape_cast %491 : vector<1x8x32xf32> to vector<8x32xf32>
    %493 = vector.shape_cast %489 : vector<8x32xf32> to vector<1x8x32xf32>
    tpu.vector_store %arg13[%c0_152, %c8_153, %c0_154], %493 {strides = array<i32>} : memref<1x16x32xf32, #tpu.memory_space<vmem>>, vector<1x8x32xf32>,
    %c0_155 = arith.constant 0 : index
    %c8_156 = arith.constant 8 : index
    %c0_157 = arith.constant 0 : index
    %494 = vector.load %arg14[%c0_155, %c8_156, %c0_157] : memref<1x16x32xf32, #tpu.memory_space<vmem>>, vector<1x8x32xf32>
    %495 = vector.shape_cast %494 : vector<1x8x32xf32> to vector<8x32xf32>
    %496 = vector.shape_cast %487 : vector<8x32xf32> to vector<1x8x32xf32>
    tpu.vector_store %arg14[%c0_155, %c8_156, %c0_157], %496 {strides = array<i32>} : memref<1x16x32xf32, #tpu.memory_space<vmem>>, vector<1x8x32xf32>,
    %c0_158 = arith.constant 0 : index
    %c0_159 = arith.constant 0 : index
    %497 = vector.load %arg17[%c0_158, %c0_159] : memref<64x32xf32, #tpu.memory_space<vmem>>, vector<64x32xf32>
    %c0_160 = arith.constant 0 : index
    %c0_161 = arith.constant 0 : index
    %498 = vector.load %arg8[%c0_160, %c0_161] : memref<32x32xf32, #tpu.memory_space<vmem>>, vector<32x32xf32>
    %cst_162 = arith.constant dense<0.000000e+00> : vector<64x32xf32>
    %499 = tpu.matmul %497, %498, %cst_162 {dimension_numbers = #tpu.dot_dimension_numbers<[1], [0], [0], [1], [0, 0, 1, 1], [], []>} : vector<64x32xf32>, vector<32x32xf32>, vector<64x32xf32> -> vector<64x32xf32>
    %c0_163 = arith.constant 0 : index
    %c0_164 = arith.constant 0 : index
    %500 = vector.load %arg9[%c0_163, %c0_164] : memref<1x32xf32, #tpu.memory_space<vmem>>, vector<1x32xf32>
    %501 = vector.broadcast %500 : vector<1x32xf32> to vector<64x32xf32>
    %502 = arith.addf %499, %501 : vector<64x32xf32>
    %cst_165 = arith.constant 0.000000e+00 : f32
    %503 = vector.broadcast %cst_165 : f32 to vector<64x32xf32>
    %504 = arith.maximumf %502, %503 : vector<64x32xf32>
    %c0_166 = arith.constant 0 : index
    %c0_167 = arith.constant 0 : index
    %505 = vector.load %arg10[%c0_166, %c0_167] : memref<32x2xf32, #tpu.memory_space<vmem>>, vector<32x2xf32>
    %cst_168 = arith.constant dense<0.000000e+00> : vector<64x2xf32>
    %506 = tpu.matmul %504, %505, %cst_168 {dimension_numbers = #tpu.dot_dimension_numbers<[1], [0], [0], [1], [0, 0, 1, 1], [], []>} : vector<64x32xf32>, vector<32x2xf32>, vector<64x2xf32> -> vector<64x2xf32>
    %c0_169 = arith.constant 0 : index
    %c0_170 = arith.constant 0 : index
    %507 = vector.load %arg11[%c0_169, %c0_170] : memref<1x2xf32, #tpu.memory_space<vmem>>, vector<1x2xf32>
    %508 = vector.broadcast %507 : vector<1x2xf32> to vector<64x2xf32>
    %509 = arith.addf %506, %508 : vector<64x2xf32>
    %510 = vector.shape_cast %509 : vector<64x2xf32> to vector<1x64x2xf32>
    %cst_171 = arith.constant dense<0xFF800000> : vector<1xf32>
    %511 = vector.multi_reduction <maximumf>, %510, %cst_171 [1, 2] : vector<1x64x2xf32> to vector<1xf32>
    %512 = vector.shape_cast %511 : vector<1xf32> to vector<1x1x1xf32>
    %513 = vector.extract %512[0, 0, 0] : f32 from vector<1x1x1xf32>
    %514 = vector.broadcast %513 : f32 to vector<64x2xf32>
    %515 = arith.subf %509, %514 : vector<64x2xf32>
    %516 = math.exp %515 : vector<64x2xf32>
    %517 = tpu.iota {dimensions = array<i32: 0>} : vector<8x8xi32>
    %518 = tpu.iota {dimensions = array<i32: 1>} : vector<8x8xi32>
    %519 = arith.cmpi eq, %517, %518 : vector<8x8xi32>
    %520 = arith.extui %519 : vector<8x8xi1> to vector<8x8xi32>
    %521 = arith.sitofp %520 : vector<8x8xi32> to vector<8x8xf32>
    %522 = tpu.concatenate %521, %521, %521, %521, %521, %521, %521, %521 in 1 : vector<8x8xf32>, vector<8x8xf32>, vector<8x8xf32>, vector<8x8xf32>, vector<8x8xf32>, vector<8x8xf32>, vector<8x8xf32>, vector<8x8xf32> -> vector<8x64xf32>
    %cst_172 = arith.constant dense<0.000000e+00> : vector<8x2xf32>
    %523 = tpu.matmul %522, %516, %cst_172 {dimension_numbers = #tpu.dot_dimension_numbers<[1], [0], [0], [1], [0, 0, 1, 1], [], []>} : vector<8x64xf32>, vector<64x2xf32>, vector<8x2xf32> -> vector<8x2xf32>
    %524 = math.log %523 : vector<8x2xf32>
    %525 = vector.broadcast %513 : f32 to vector<8x2xf32>
    %526 = arith.addf %525, %524 : vector<8x2xf32>
    %527 = tpu.concatenate %526, %526, %526, %526, %526, %526, %526, %526 in 0 : vector<8x2xf32>, vector<8x2xf32>, vector<8x2xf32>, vector<8x2xf32>, vector<8x2xf32>, vector<8x2xf32>, vector<8x2xf32>, vector<8x2xf32> -> vector<64x2xf32>
    %528 = arith.subf %509, %527 : vector<64x2xf32>
    %c0_173 = arith.constant 0 : index
    %c0_174 = arith.constant 0 : index
    %c0_175 = arith.constant 0 : index
    %529 = vector.load %arg12[%c0_173, %c0_174, %c0_175] : memref<1x64x2xf32, #tpu.memory_space<vmem>>, vector<1x64x2xf32>
    %530 = vector.shape_cast %529 : vector<1x64x2xf32> to vector<64x2xf32>
    %531 = vector.shape_cast %528 : vector<64x2xf32> to vector<1x64x2xf32>
    tpu.vector_store %arg12[%c0_173, %c0_174, %c0_175], %531 {strides = array<i32>} : memref<1x64x2xf32, #tpu.memory_space<vmem>>, vector<1x64x2xf32>,
    return
  }
  func.func @transform_0(%arg0: i32) -> (i32, i32, i32) {
    %c0_i32 = arith.constant 0 : i32
    %c0_i32_0 = arith.constant 0 : i32
    %c0_i32_1 = arith.constant 0 : i32
    return %arg0, %c0_i32, %c0_i32_0 : i32, i32, i32
  }
  func.func @transform_1(%arg0: i32) -> (i32, i32) {
    %c0_i32 = arith.constant 0 : i32
    %c0_i32_0 = arith.constant 0 : i32
    %c0_i32_1 = arith.constant 0 : i32
    return %c0_i32, %c0_i32_0 : i32, i32
  }
  func.func @transform_2(%arg0: i32) -> (i32, i32) {
    %c0_i32 = arith.constant 0 : i32
    %c0_i32_0 = arith.constant 0 : i32
    %c0_i32_1 = arith.constant 0 : i32
    return %c0_i32, %c0_i32_0 : i32, i32
  }
  func.func @transform_3(%arg0: i32) -> (i32, i32) {
    %c0_i32 = arith.constant 0 : i32
    %c0_i32_0 = arith.constant 0 : i32
    %c0_i32_1 = arith.constant 0 : i32
    return %c0_i32, %c0_i32_0 : i32, i32
  }
  func.func @transform_4(%arg0: i32) -> (i32, i32) {
    %c0_i32 = arith.constant 0 : i32
    %c0_i32_0 = arith.constant 0 : i32
    %c0_i32_1 = arith.constant 0 : i32
    return %c0_i32, %c0_i32_0 : i32, i32
  }
  func.func @transform_5(%arg0: i32) -> (i32, i32) {
    %c0_i32 = arith.constant 0 : i32
    %c0_i32_0 = arith.constant 0 : i32
    %c0_i32_1 = arith.constant 0 : i32
    return %c0_i32, %c0_i32_0 : i32, i32
  }
  func.func @transform_6(%arg0: i32) -> (i32, i32) {
    %c0_i32 = arith.constant 0 : i32
    %c0_i32_0 = arith.constant 0 : i32
    %c0_i32_1 = arith.constant 0 : i32
    return %c0_i32, %c0_i32_0 : i32, i32
  }
  func.func @transform_7(%arg0: i32) -> (i32, i32) {
    %c0_i32 = arith.constant 0 : i32
    %c0_i32_0 = arith.constant 0 : i32
    %c0_i32_1 = arith.constant 0 : i32
    return %c0_i32, %c0_i32_0 : i32, i32
  }
  func.func @transform_8(%arg0: i32) -> (i32, i32) {
    %c0_i32 = arith.constant 0 : i32
    %c0_i32_0 = arith.constant 0 : i32
    %c0_i32_1 = arith.constant 0 : i32
    return %c0_i32, %c0_i32_0 : i32, i32
  }
  func.func @transform_9(%arg0: i32) -> (i32, i32) {
    %c0_i32 = arith.constant 0 : i32
    %c0_i32_0 = arith.constant 0 : i32
    %c0_i32_1 = arith.constant 0 : i32
    return %c0_i32, %c0_i32_0 : i32, i32
  }
  func.func @transform_10(%arg0: i32) -> (i32, i32) {
    %c0_i32 = arith.constant 0 : i32
    %c0_i32_0 = arith.constant 0 : i32
    %c0_i32_1 = arith.constant 0 : i32
    return %c0_i32, %c0_i32_0 : i32, i32
  }
  func.func @transform_11(%arg0: i32) -> (i32, i32, i32) {
    %c0_i32 = arith.constant 0 : i32
    %c0_i32_0 = arith.constant 0 : i32
    %c0_i32_1 = arith.constant 0 : i32
    return %arg0, %c0_i32, %c0_i32_0 : i32, i32, i32
  }
  func.func @transform_12(%arg0: i32) -> (i32, i32, i32) {
    %c0_i32 = arith.constant 0 : i32
    %c0_i32_0 = arith.constant 0 : i32
    %c0_i32_1 = arith.constant 0 : i32
    return %arg0, %c0_i32, %c0_i32_0 : i32, i32, i32
  }
  func.func @transform_13(%arg0: i32) -> (i32, i32, i32) {
    %c0_i32 = arith.constant 0 : i32
    %c0_i32_0 = arith.constant 0 : i32
    %c0_i32_1 = arith.constant 0 : i32
    return %arg0, %c0_i32, %c0_i32_0 : i32, i32, i32
  }
}

</mosaic_0001>

<bundles_post_ra>
// kernel: tpu_custom_call.1
= control target key start
LH: loop header
LB: loop body
LE: loop exit
PB: predicated region body
PF: predicated region fallthrough
CT: control target
= control target key end

     0   :  { %19 = vsyncpa [#allocation6], 0  ;;  %s4146_s0 = inlined_call_operand.vmem [shape: f32[1,64,4], index: 0, kind: input, shape index: {}]   ;;  %s4147_s1 = inlined_call_operand.hbm [shape: f32[4,128], index: 1, kind: input, shape index: {}]   ;;  %s4148_s2 = inlined_call_operand.vmem [shape: f32[32,128], index: 2, kind: input, shape index: {}]   ;;  %s4149_s3 = inlined_call_operand.hbm [shape: f32[1,128], index: 3, kind: input, shape index: {}]   ;;  %s4150_s4 = inlined_call_operand.vmem [shape: f32[32,128], index: 4, kind: input, shape index: {}]   ;;  %s4151_s5 = inlined_call_operand.vmem [shape: f32[32,128], index: 5, kind: input, shape index: {}]   ;;  %s4152_s6 = inlined_call_operand.hbm [shape: f32[1,128], index: 6, kind: input, shape index: {}]   ;;  %s4153_s7 = inlined_call_operand.vmem [shape: f32[32,32], index: 7, kind: input, shape index: {}]   ;;  %s4154_s8 = inlined_call_operand.vmem [shape: f32[1,32], index: 8, kind: input, shape index: {}]   ;;  %s4155_s9 = inlined_call_operand.vmem [shape: f32[32,2], index: 9, kind: input, shape index: {}]   ;;  %s4156_s10 = inlined_call_operand.vmem [shape: f32[1,2], index: 10, kind: input, shape index: {}]   ;;  %s4157_s11 = inlined_call_operand.vmem [shape: f32[1,64,2], index: 11, kind: output, shape index: {0}]   ;;  %s4158_s12 = inlined_call_operand.hbm [shape: f32[1,16,32], index: 12, kind: output, shape index: {1}]   ;;  %s4159_s13 = inlined_call_operand.hbm [shape: f32[1,16,32], index: 13, kind: output, shape index: {2}]  }
   0x1   :  { %20 = vsyncpa [#allocation9], 0 }
   0x2   :  { %21 = vsyncpa [#allocation7], 0 }
   0x3   :  { %22 = vsyncpa [#allocation13], 0  ;;  %s3467_s25 = smov [#allocation8]   ;;  %s3468_s27 = smov [#allocation5]  }
   0x4   :  { %s43_s26 = sshll.u32 %s3467_s25, 4  ;;  %s31_s28 = sshll.u32 %s3468_s27, 4  ;;  %s44_s26 = int_to_ptr.vmem [resolvable:$true] %s43_s26  ;;  %s32_s28 = int_to_ptr.vmem [resolvable:$true] %s31_s28 }
   0x5   :  { %s3349_s14 = scalar_lea.hbm %s4149_s3, 16 }
   0x6   :  { %p3350_p0 = scmp.ne.s32.totalorder %s4149_s3, %s3349_s14  ;;  %p3353_p1 = scmp.lt.u32.totalorder %s3349_s14, %s4149_s3 }
   0x8   :  { %p3355_p2 = pnand %p3353_p1, %p3350_p0 }
   0xa   :  { %3358 = shalt.err (!%p3355_p2)
}
   0xb   :  { %s3359_s19 = scalar_lea.vmem %s44_s26, 16  ;;  %s3363_s20 = scalar_lea.vmem %s44_s26, 32 }
   0xc   :  { %p3360_p3 = scmp.ne.s32.totalorder %s44_s26, %s3359_s19  ;;  %p3364_p4 = scmp.lt.s32.totalorder %s44_s26, %s44_s26 }
   0xd   :  { %p3365_p5 = scmp.lt.s32.totalorder %s3363_s20, %s3359_s19 }
   0xf   :  { %p3366_p6 = por %p3365_p5, %p3364_p4 }
  0x11   :  { %p3367_p7 = pnand %p3366_p6, %p3360_p3 }
  0x13   :  { %3370 = shalt.err (!%p3367_p7)
}
  0x14   :  { %46 = dma.hbm_to_vmem [thread:$0]  %s4149_s3, 16, %s44_s26, [#allocation9]  }
  0x15   :  { %s3371_s25 = scalar_lea.hbm %s4147_s1, 64 }
  0x16   :  { %p3372_p8 = scmp.ne.s32.totalorder %s4147_s1, %s3371_s25  ;;  %p3375_p9 = scmp.lt.u32.totalorder %s3371_s25, %s4147_s1 }
  0x18   :  { %p3377_p10 = pnand %p3375_p9, %p3372_p8 }
  0x1a   :  { %3380 = shalt.err (!%p3377_p10)
}
  0x1b   :  { %s3381_s15 = scalar_lea.vmem %s32_s28, 64  ;;  %p3386_p12 = scmp.lt.s32.totalorder %s32_s28, %s32_s28 }
  0x1c   :  { %p3382_p11 = scmp.ne.s32.totalorder %s32_s28, %s3381_s15  ;;  %p3387_p13 = scmp.lt.s32.totalorder %s3381_s15, %s3381_s15 }
  0x1e   :  { %p3388_p0 = por %p3387_p13, %p3386_p12 }
  0x20   :  { %p3389_p1 = pnand %p3388_p0, %p3382_p11 }
  0x22   :  { %3392 = shalt.err (!%p3389_p1)
}
  0x23   :  { %34 = dma.hbm_to_vmem [thread:$0]  %s4147_s1, 64, %s32_s28, [#allocation6]  }
  0x24   :  { %s3469_s16 = smov [#allocation10]   ;;  %s3393_s20 = scalar_lea.hbm %s4152_s6, 16 }
  0x25   :  { %s57_s17 = sshll.u32 %s3469_s16, 4  ;;  %p3394_p2 = scmp.ne.s32.totalorder %s4152_s6, %s3393_s20  ;;  %s58_s17 = int_to_ptr.vmem [resolvable:$true] %s57_s17 }
  0x26   :  { %p3397_p3 = scmp.lt.u32.totalorder %s3393_s20, %s4152_s6 }
  0x28   :  { %p3399_p4 = pnand %p3397_p3, %p3394_p2 }
  0x2a   :  { %3402 = shalt.err (!%p3399_p4)
}
  0x2b   :  { %s3403_s25 = scalar_lea.vmem %s58_s17, 16  ;;  %s3407_s1 = scalar_lea.vmem %s58_s17, 32 }
  0x2c   :  { %p3404_p5 = scmp.ne.s32.totalorder %s58_s17, %s3403_s25  ;;  %p3408_p6 = scmp.lt.s32.totalorder %s58_s17, %s58_s17 }
  0x2d   :  { %p3409_p7 = scmp.lt.s32.totalorder %s3407_s1, %s3403_s25 }
  0x2f   :  { %p3410_p8 = por %p3409_p7, %p3408_p6 }
  0x31   :  { %p3411_p9 = pnand %p3410_p8, %p3404_p5 }
  0x33   :  { %3414 = shalt.err (!%p3411_p9)
}
  0x34   :  { %60 = dma.hbm_to_vmem [thread:$0]  %s4152_s6, 16, %s58_s17, [#allocation9]  }
  0x35   :  { %3459 = dma.done.wait [#allocation6], 64  }
  0x36   :  { %3460 = vsyncadd [#allocation6], 4294967232 }
  0x37   :  { %3461 = dma.done.wait [#allocation9], 32  }
  0x38   :  { %3462 = vsyncadd [#allocation9], 4294967264  ;;  %v3470_v0 = vmov 0.0|0.0   ;;  %vm3471_vm0 = vmmov 0   ;;  %v3472_v1 = vmov 0.0   ;;  %vm119_vm1 = vcmask 1043456  }
  0x39   :  { %3051 = vmatprep.subr.bf16.mxu1 %v3470_v0  ;;  %2804 = vmatprep.mubr.msk.f32.mxu1 %vm3471_vm0, %v3472_v1  ;;  %vm94_vm2 = vcmask 31744   ;;  %v236_v2 = vld [vmem:[%s4148_s2] sm:$0xff]  ;;  %v237_v3 = vld [vmem:[%s4148_s2 + $0x8] sm:$0xff]  ;;  %v238_v8 = vld [vmem:[%s4148_s2 + $0x10] sm:$0xff]  ;;  %s3474_s21 = smov 32   ;;  %vm241_vm3 = vcmask 261120  }
  0x3a   :  { %v86_v4 = vld [vmem:[#allocation5] sm:$0xf]  ;;  %v3600_v5 = vpack.c.bf16 %v237_v3, %v236_v2  ;;  %v79_v7 = vld [vmem:[%s4146_s0 + $0x8] sm:$0xff]  ;;  %v239_v9 = vld [vmem:[%s4148_s2 + $0x18] sm:$0xff]  ;;  %s3473_s2 = smov 64   ;;  %s3477_s24 = smov 24  }
  0x3b   :  { %2782 = vmatprep.subr.msk.mxu0 %vm119_vm1, %v86_v4  ;;  %v78_v6 = vld [vmem:[%s4146_s0] sm:$0xff]  ;;  %v3617_v10 = vpack.c.bf16 %v239_v9, %v238_v8  ;;  %v80_v46 = vld [vmem:[%s4146_s0 + $0x10] sm:$0xff]  ;;  %v81_v47 = vld [vmem:[%s4146_s0 + $0x18] sm:$0xff]  ;;  %s3479_s25 = smov 48   ;;  %s3480_s1 = smov 56   ;;  %vm2435_vm5 = vcmask 64512  }
  0x3c   :  { %2783 = vmatpush3.msk.msra.mxu0 %vm119_vm1, %v86_v4  ;;  %2784 = vmatprep.mubr.msk.f32.mxu0 %vm94_vm2, %v78_v6  ;;  %v3634_v12 = vld [vmem:[#allocation8] ss:$0 sm:$0xff]  ;;  %v83_v49 = vld [vmem:[%s4146_s0 + $0x28] sm:$0xff]  ;;  %v84_v50 = vld [vmem:[%s4146_s0 + $0x30] sm:$0xff]  ;;  %s3481_s28 = smov 96   ;;  %vm2437_vm6 = vcmask 130048  }
  0x3d   :  { %3053 = vmatpush3.bf16.msra.mxu1 %v3600_v5  ;;  %2785 = vmatmul.mubr.msk.f32.vlgmr.msra.gmra.mrb[0].mxu0 %vm94_vm2, %v79_v7  ;;  %v82_v48 = vld [vmem:[%s4146_s0 + $0x20] sm:$0xff]  ;;  %v85_v51 = vld [vmem:[%s4146_s0 + $0x38] sm:$0xff]  ;;  %vm2439_vm7 = vcmask 195584   ;;  %vm2442_vm8 = vcmask 326656   ;;  %vm2444_vm9 = vcmask 392192   ;;  %vm2446_vm10 = vcmask 457728  }
  0x3e   :  { %3054 = vmatprep.subr.bf16.mxu1 %v3470_v0  ;;  %3063 = vmatprep.subr.bf16.mxu0 %v3470_v0  ;;  %vm2356_vm11 = vcmask 15360   ;;  %vm2448_vm12 = vcmask 523264   ;;  %s3483_s30 = smov [#allocation12]  }
  0x3f   :  { %3065 = vmatpush3.bf16.msra.mxu0 %v3600_v5  ;;  %2787 = vmatprep.mubr.msk.f32.mxu0 %vm94_vm2, %v80_v46  ;;  %s2560_s14 = sshll.u32 %s3483_s30, 4  ;;  %s2561_s14 = int_to_ptr.vmem [resolvable:$true] %s2560_s14 }
  0x40   :  { %3066 = vmatprep.subr.bf16.mxu0 %v3470_v0 }
  0x41   :  { %3056 = vmatpush3.bf16.msra.mxu1 %v3617_v10  ;;  %2788 = vmatmul.mubr.msk.f32.gmra.mrb[2].mxu0 %vm94_vm2, %v81_v47 }
  0x42   :  { %3057 = vmatprep.subr.bf16.mxu1 %v3470_v0  ;;  %2790 = vmatprep.mubr.msk.f32.mxu0 %vm94_vm2, %v82_v48 }
  0x43   :  { %3068 = vmatpush3.bf16.msra.mxu0 %v3617_v10 }
  0x44   :  { %2805 = vmatmul.mubr.f32.vlgmr.msra.gmra.mrb[0].mxu1 %v3472_v1  ;;  %3075 = vmatprep.subr.bf16.mxu0 %v3470_v0 }
  0x45   :  { %3059 = vmatpush3.bf16.msra.mxu1 %v3600_v5  ;;  %2815 = vmatprep.mubr.msk.f32.mxu1 %vm3471_vm0, %v3472_v1 }
  0x46   :  { %3060 = vmatprep.subr.bf16.mxu1 %v3470_v0  ;;  %2791 = vmatmul.mubr.msk.f32.gmra.mrb[4].mxu0 %vm94_vm2, %v83_v49 }
  0x47   :  { %2793 = vmatprep.mubr.msk.f32.mxu0 %vm94_vm2, %v84_v50 }
  0x49   :  { %3062 = vmatpush3.bf16.msra.mxu1 %v3617_v10 }
  0x4a   :  { %3069 = vmatprep.subr.bf16.mxu1 %v3470_v0  ;;  %2794 = vmatmul.mubr.msk.f32.gmra.mrb[6].mxu0 %vm94_vm2, %v85_v51 }
  0x4b   :  { %2826 = vmatprep.mubr.msk.f32.mxu0 %vm3471_vm0, %v3472_v1 }
 0x110   :  { %v2786_v11 = vpop.f32.mrb[0].mxu0 }
 0x111   :  { %v189_v13 = vpop.f32.mrb[1].mxu0  ;;  %v195_v32 = vadd.f32 %v2786_v11, %v3634_v12 }
 0x112   :  { %v190_v14 = vadd.f32 %v3634_v12, %v189_v13 }
 0x114   :  { %v2789_v55 = vpop.f32.mrb[2].mxu0 }
 0x115   :  { %v199_v56 = vpop.f32.mrb[3].mxu0 }
 0x116   :  { %v200_v62 = vadd.f32 %v3634_v12, %v199_v56 }
 0x117   :  { %v311_v15 = vpop.f32.mrb[0].mxu1 }
 0x118   :  { %v315_v16 = vadd.f32 %v311_v15, %v190_v14  ;;  %v2806_v17 = vpop.f32.mrb[1].mxu1 }
 0x119   :  { %v3680_v57 = vpop.f32.mrb[4].mxu0 }
 0x11a   :  { %3203 = vtanh.f32 %v315_v16  ;;  %v2589_v19 = vmul.f32 -1.442695, %v315_v16  ;;  %v3682_v58 = vpop.f32.mrb[5].mxu0 }
 0x11c   :  { %3205 = vpow2.f32 %v2589_v19 }
 0x11d   :  { %v3684_v59 = vpop.f32.mrb[6].mxu0 }
 0x11e   :  { %v3686_v60 = vpop.f32.mrb[7].mxu0 }
 0x124   :  { %v3204_v18 = vpop.eup %3203 }
 0x125   :  { %325 = vrot.lane.b32.xlu0 %v3204_v18, %s3473_s2 }
 0x126   :  { %v3206_v20 = vpop.eup %3205 }
 0x127   :  { %v319_v21 = vadd.f32 1.0, %v3206_v20 }
 0x129   :  { %3207 = vrcp.f32 %v319_v21  ;;  %v205_v21 = vadd.f32 %v2789_v55, %v3634_v12 }
 0x133   :  { %v3208_v22 = vpop.eup %3207 }
 0x134   :  { %v323_v25 = vmul.f32 0.0, %v3208_v22 }
 0x197   :  { %v326_v23 = vpop.permute.xlu0 %325 }
 0x198   :  { %v328_v24 = vmul.f32 %v3208_v22, %v326_v23 }
 0x19a   :  { %330 = vrot.lane.b32.xlu0 %v328_v24, %s3474_s21 }
 0x20c   :  { %v331_v26 = vpop.permute.xlu0 %330 }
 0x20d   :  { %v333_v27 = vadd.f32 %v331_v26, %v323_v25 }
 0x20f   :  { %3209 = vtanh.f32 %v333_v27 }
 0x219   :  { %v3210_v28 = vpop.eup %3209 }
 0x21a   :  { %336 = vrot.lane.b32.xlu1 %v3210_v28, %s3473_s2 }
 0x28c   :  { %v337_v29 = vpop.permute.xlu1 %336 }
 0x28d   :  { %v339_v30 = vmul.f32 %v3208_v22, %v337_v29 }
 0x28f   :  { %341 = vrot.lane.b32.xlu1 %v339_v30, %s3474_s21 }
 0x301   :  { %v342_v31 = vpop.permute.xlu1 %341 }
 0x302   :  { %344 = vst.msk [vmem:[#allocation3] sm:$0xff] %vm241_vm3, %v342_v31  ;;  %2816 = vmatmul.mubr.msk.f32.vlgmr.msra.gmra.mrb[2].mxu1 %vm241_vm3, %v342_v31 }
 0x303   :  { %3071 = vmatpush3.bf16.msra.mxu1 %v3600_v5  ;;  %2837 = vmatprep.mubr.msk.f32.mxu1 %vm3471_vm0, %v3472_v1 }
 0x304   :  { %3072 = vmatprep.subr.bf16.mxu1 %v3470_v0 }
 0x307   :  { %3074 = vmatpush3.bf16.msra.mxu1 %v3617_v10 }
 0x308   :  { %3081 = vmatprep.subr.bf16.mxu1 %v3470_v0 }
 0x3d5   :  { %v414_v33 = vpop.f32.mrb[2].mxu1 }
 0x3d6   :  { %v418_v34 = vadd.f32 %v414_v33, %v195_v32  ;;  %v2817_v35 = vpop.f32.mrb[3].mxu1 }
 0x3d8   :  { %3211 = vtanh.f32 %v418_v34  ;;  %v2591_v37 = vmul.f32 -1.442695, %v418_v34 }
 0x3da   :  { %3213 = vpow2.f32 %v2591_v37 }
 0x3e2   :  { %v3212_v36 = vpop.eup %3211 }
 0x3e3   :  { %428 = vrot.lane.b32.xlu0 %v3212_v36, %s3473_s2 }
 0x3e4   :  { %v3214_v38 = vpop.eup %3213 }
 0x3e5   :  { %v422_v39 = vadd.f32 1.0, %v3214_v38 }
 0x3e7   :  { %3215 = vrcp.f32 %v422_v39  ;;  %v210_v39 = vadd.f32 %v3634_v12, %v3682_v58  ;;  %v215_v58 = vadd.f32 %v3680_v57, %v3634_v12 }
 0x3f1   :  { %v3216_v40 = vpop.eup %3215 }
 0x3f2   :  { %v426_v43 = vmul.f32 %v3216_v40, %v333_v27 }
 0x455   :  { %v429_v41 = vpop.permute.xlu0 %428 }
 0x456   :  { %v431_v42 = vmul.f32 %v3216_v40, %v429_v41 }
 0x458   :  { %433 = vrot.lane.b32.xlu1 %v431_v42, %s3474_s21 }
 0x4ca   :  { %v434_v44 = vpop.permute.xlu1 %433 }
 0x4cb   :  { %v436_v45 = vadd.f32 %v434_v44, %v426_v43 }
 0x4cd   :  { %3217 = vtanh.f32 %v436_v45 }
 0x4d7   :  { %v3218_v52 = vpop.eup %3217 }
 0x4d8   :  { %439 = vrot.lane.b32.xlu0 %v3218_v52, %s3473_s2 }
 0x54a   :  { %v440_v53 = vpop.permute.xlu0 %439 }
 0x54b   :  { %v442_v54 = vmul.f32 %v3216_v40, %v440_v53 }
 0x54d   :  { %444 = vrot.lane.b32.xlu1 %v442_v54, %s3474_s21 }
 0x5bf   :  { %v445_v61 = vpop.permute.xlu1 %444 }
 0x5c0   :  { %447 = vst.msk [vmem:[#allocation3 + $0x8] sm:$0xff] %vm241_vm3, %v445_v61  ;;  %2827 = vmatmul.mubr.msk.f32.vlgmr.msra.gmra.mrb[8].mxu0 %vm241_vm3, %v445_v61 }
 0x5c1   :  { %3077 = vmatpush3.bf16.msra.mxu0 %v3600_v5  ;;  %2848 = vmatprep.mubr.msk.f32.mxu0 %vm3471_vm0, %v3472_v1 }
 0x5c2   :  { %3078 = vmatprep.subr.bf16.mxu0 %v3470_v0 }
 0x5c5   :  { %3080 = vmatpush3.bf16.msra.mxu0 %v3617_v10 }
 0x5c6   :  { %3087 = vmatprep.subr.bf16.mxu0 %v3470_v0 }
 0x693   :  { %v517_v63 = vpop.f32.mrb[8].mxu0 }
 0x694   :  { %v521_v2 = vadd.f32 %v517_v63, %v200_v62  ;;  %v2828_v3 = vpop.f32.mrb[9].mxu0 }
 0x696   :  { %3219 = vtanh.f32 %v521_v2  ;;  %v2593_v6 = vmul.f32 -1.442695, %v521_v2 }
 0x698   :  { %3221 = vpow2.f32 %v2593_v6 }
 0x6a0   :  { %v3220_v4 = vpop.eup %3219 }
 0x6a1   :  { %531 = vrot.lane.b32.xlu0 %v3220_v4, %s3473_s2 }
 0x6a2   :  { %v3222_v7 = vpop.eup %3221 }
 0x6a3   :  { %v525_v8 = vadd.f32 1.0, %v3222_v7 }
 0x6a5   :  { %3223 = vrcp.f32 %v525_v8 }
 0x6af   :  { %v3224_v9 = vpop.eup %3223 }
 0x6b0   :  { %v529_v14 = vmul.f32 %v3224_v9, %v436_v45 }
 0x713   :  { %v532_v11 = vpop.permute.xlu0 %531 }
 0x714   :  { %v534_v13 = vmul.f32 %v3224_v9, %v532_v11  ;;  %v1080_v11 = vld [vmem:[%s4150_s4] sm:$0xff] }
 0x716   :  { %536 = vrot.lane.b32.xlu1 %v534_v13, %s3474_s21  ;;  %v1081_v13 = vld [vmem:[%s4150_s4 + $0x8] sm:$0xff] }
 0x788   :  { %v537_v15 = vpop.permute.xlu1 %536 }
 0x789   :  { %v539_v16 = vadd.f32 %v537_v15, %v529_v14  ;;  %v3099_v14 = vpack.c.bf16 %v1081_v13, %v1080_v11 }
 0x78b   :  { %3225 = vtanh.f32 %v539_v16 }
 0x795   :  { %v3226_v17 = vpop.eup %3225 }
 0x796   :  { %542 = vrot.lane.b32.xlu0 %v3226_v17, %s3473_s2 }
 0x808   :  { %v543_v18 = vpop.permute.xlu0 %542 }
 0x809   :  { %v545_v19 = vmul.f32 %v3224_v9, %v543_v18  ;;  %v1082_v18 = vld [vmem:[%s4150_s4 + $0x10] sm:$0xff] }
 0x80b   :  { %547 = vrot.lane.b32.xlu1 %v545_v19, %s3474_s21  ;;  %v1083_v19 = vld [vmem:[%s4150_s4 + $0x18] sm:$0xff] }
 0x87d   :  { %v548_v20 = vpop.permute.xlu1 %547 }
 0x87e   :  { %550 = vst.msk [vmem:[#allocation3 + $0x10] sm:$0xff] %vm241_vm3, %v548_v20  ;;  %2838 = vmatmul.mubr.msk.f32.vlgmr.msra.gmra.mrb[4].mxu1 %vm241_vm3, %v548_v20  ;;  %v3103_v20 = vpack.c.bf16 %v1083_v19, %v1082_v18 }
 0x87f   :  { %3083 = vmatpush3.bf16.msra.mxu1 %v3600_v5  ;;  %2859 = vmatprep.mubr.msk.f32.mxu1 %vm3471_vm0, %v3472_v1 }
 0x880   :  { %3084 = vmatprep.subr.bf16.mxu1 %v3470_v0 }
 0x883   :  { %3086 = vmatpush3.bf16.msra.mxu1 %v3617_v10 }
 0x884   :  { %3093 = vmatprep.subr.bf16.mxu1 %v3470_v0 }
 0x951   :  { %v620_v22 = vpop.f32.mrb[4].mxu1 }
 0x952   :  { %v624_v23 = vadd.f32 %v620_v22, %v205_v21  ;;  %v2839_v24 = vpop.f32.mrb[5].mxu1  ;;  %v1072_v22 = vld [vmem:[#allocation3] sm:$0xff] }
 0x953   :  { %v1074_v24 = vld [vmem:[#allocation3 + $0x10] sm:$0xff] }
 0x954   :  { %3227 = vtanh.f32 %v624_v23  ;;  %v2595_v26 = vmul.f32 -1.442695, %v624_v23  ;;  %v1073_v23 = vld [vmem:[#allocation3 + $0x8] sm:$0xff] }
 0x956   :  { %3229 = vpow2.f32 %v2595_v26 }
 0x95e   :  { %v3228_v25 = vpop.eup %3227 }
 0x95f   :  { %634 = vrot.lane.b32.xlu0 %v3228_v25, %s3473_s2 }
 0x960   :  { %v3230_v27 = vpop.eup %3229 }
 0x961   :  { %v628_v28 = vadd.f32 1.0, %v3230_v27 }
 0x963   :  { %3231 = vrcp.f32 %v628_v28  ;;  %v220_v28 = vadd.f32 %v3634_v12, %v3686_v60 }
 0x96d   :  { %v3232_v29 = vpop.eup %3231 }
 0x96e   :  { %v632_v32 = vmul.f32 %v3232_v29, %v539_v16 }
 0x9d1   :  { %v635_v30 = vpop.permute.xlu0 %634 }
 0x9d2   :  { %v637_v31 = vmul.f32 %v3232_v29, %v635_v30 }
 0x9d4   :  { %639 = vrot.lane.b32.xlu1 %v637_v31, %s3474_s21 }
 0xa46   :  { %v640_v33 = vpop.permute.xlu1 %639 }
 0xa47   :  { %v642_v34 = vadd.f32 %v640_v33, %v632_v32 }
 0xa49   :  { %3233 = vtanh.f32 %v642_v34 }
 0xa53   :  { %v3234_v35 = vpop.eup %3233 }
 0xa54   :  { %645 = vrot.lane.b32.xlu0 %v3234_v35, %s3473_s2 }
 0xac6   :  { %v646_v36 = vpop.permute.xlu0 %645 }
 0xac7   :  { %v648_v37 = vmul.f32 %v3232_v29, %v646_v36 }
 0xac9   :  { %650 = vrot.lane.b32.xlu1 %v648_v37, %s3474_s21 }
 0xb3b   :  { %v651_v38 = vpop.permute.xlu1 %650 }
 0xb3c   :  { %653 = vst.msk [vmem:[#allocation3 + $0x18] sm:$0xff] %vm241_vm3, %v651_v38  ;;  %2849 = vmatmul.mubr.msk.f32.vlgmr.msra.gmra.mrb[10].mxu0 %vm241_vm3, %v651_v38 }
 0xb3d   :  { %3089 = vmatpush3.bf16.msra.mxu0 %v3600_v5  ;;  %2870 = vmatprep.mubr.msk.f32.mxu0 %vm3471_vm0, %v3472_v1 }
 0xb3e   :  { %3090 = vmatprep.subr.bf16.mxu0 %v3470_v0 }
 0xb41   :  { %3092 = vmatpush3.bf16.msra.mxu0 %v3617_v10 }
 0xb42   :  { %3100 = vmatprep.subr.bf16.mxu0 %v3099_v14 }
 0xb43   :  { %v1075_v25 = vld [vmem:[#allocation3 + $0x18] sm:$0xff] }
 0xc0f   :  { %v723_v40 = vpop.f32.mrb[10].mxu0 }
 0xc10   :  { %v727_v41 = vadd.f32 %v723_v40, %v210_v39  ;;  %v2850_v42 = vpop.f32.mrb[11].mxu0 }
 0xc12   :  { %3235 = vtanh.f32 %v727_v41  ;;  %v2597_v44 = vmul.f32 -1.442695, %v727_v41 }
 0xc14   :  { %3237 = vpow2.f32 %v2597_v44 }
 0xc1c   :  { %v3236_v43 = vpop.eup %3235 }
 0xc1d   :  { %737 = vrot.lane.b32.xlu0 %v3236_v43, %s3473_s2 }
 0xc1e   :  { %v3238_v45 = vpop.eup %3237 }
 0xc1f   :  { %v731_v46 = vadd.f32 1.0, %v3238_v45 }
 0xc21   :  { %3239 = vrcp.f32 %v731_v46 }
 0xc2b   :  { %v3240_v47 = vpop.eup %3239 }
 0xc2c   :  { %v735_v50 = vmul.f32 %v3240_v47, %v642_v34 }
 0xc8f   :  { %v738_v48 = vpop.permute.xlu0 %737 }
 0xc90   :  { %v740_v49 = vmul.f32 %v3240_v47, %v738_v48  ;;  %v1228_v48 = vld [vmem:[%s4151_s5] sm:$0xff] }
 0xc92   :  { %742 = vrot.lane.b32.xlu1 %v740_v49, %s3474_s21  ;;  %v1229_v49 = vld [vmem:[%s4151_s5 + $0x8] sm:$0xff] }
 0xd04   :  { %v743_v51 = vpop.permute.xlu1 %742 }
 0xd05   :  { %v745_v52 = vadd.f32 %v743_v51, %v735_v50  ;;  %v3786_v50 = vpack.c.bf16 %v1229_v49, %v1228_v48  ;;  %v1230_v51 = vld [vmem:[%s4151_s5 + $0x10] sm:$0xff] }
 0xd07   :  { %3241 = vtanh.f32 %v745_v52 }
 0xd11   :  { %v3242_v53 = vpop.eup %3241 }
 0xd12   :  { %748 = vrot.lane.b32.xlu0 %v3242_v53, %s3473_s2 }
 0xd84   :  { %v749_v54 = vpop.permute.xlu0 %748 }
 0xd85   :  { %v751_v55 = vmul.f32 %v3240_v47, %v749_v54 }
 0xd87   :  { %753 = vrot.lane.b32.xlu1 %v751_v55, %s3474_s21 }
 0xdf9   :  { %v754_v56 = vpop.permute.xlu1 %753 }
 0xdfa   :  { %756 = vst.msk [vmem:[#allocation3 + $0x20] sm:$0xff] %vm241_vm3, %v754_v56  ;;  %2860 = vmatmul.mubr.msk.f32.vlgmr.msra.gmra.mrb[6].mxu1 %vm241_vm3, %v754_v56 }
 0xdfb   :  { %3095 = vmatpush3.bf16.msra.mxu1 %v3600_v5  ;;  %2881 = vmatprep.mubr.msk.f32.mxu1 %vm3471_vm0, %v3472_v1 }
 0xdfc   :  { %3096 = vmatprep.subr.bf16.mxu1 %v3470_v0 }
 0xdff   :  { %3098 = vmatpush3.bf16.msra.mxu1 %v3617_v10 }
 0xe00   :  { %3107 = vmatprep.subr.bf16.mxu1 %v3470_v0 }
 0xe01   :  { %v1076_v26 = vld [vmem:[#allocation3 + $0x20] sm:$0xff] }
 0xecd   :  { %v826_v61 = vpop.f32.mrb[6].mxu1 }
 0xece   :  { %v830_v62 = vadd.f32 %v826_v61, %v215_v58  ;;  %v2861_v63 = vpop.f32.mrb[7].mxu1  ;;  %v225_v61 = vadd.f32 %v3684_v59, %v3634_v12 }
 0xed0   :  { %3243 = vtanh.f32 %v830_v62  ;;  %v2599_v5 = vmul.f32 -1.442695, %v830_v62 }
 0xed2   :  { %3245 = vpow2.f32 %v2599_v5  ;;  %v3819_v5 = vld [vmem:[#allocation10] ss:$0 sm:$0xff] }
 0xeda   :  { %v3244_v2 = vpop.eup %3243 }
 0xedb   :  { %840 = vrot.lane.b32.xlu0 %v3244_v2, %s3473_s2 }
 0xedc   :  { %v3246_v3 = vpop.eup %3245 }
 0xedd   :  { %v834_v4 = vadd.f32 1.0, %v3246_v3 }
 0xedf   :  { %3247 = vrcp.f32 %v834_v4 }
 0xee9   :  { %v3248_v6 = vpop.eup %3247 }
 0xeea   :  { %v838_v8 = vmul.f32 %v3248_v6, %v745_v52  ;;  %v1231_v52 = vld [vmem:[%s4151_s5 + $0x18] sm:$0xff]  ;;  %s3482_s5 = smov [#allocation11]  }
 0xeeb   :  { %v3796_v53 = vpack.c.bf16 %v1231_v52, %v1230_v51  ;;  %s2548_s29 = sshll.u32 %s3482_s5, 4  ;;  %s2549_s29 = int_to_ptr.vmem [resolvable:$true] %s2548_s29 }
 0xeec   :  { %s3415_s6 = scalar_lea.vmem %s2549_s29, 256  ;;  %p3420_p11 = scmp.lt.s32.totalorder %s2549_s29, %s2549_s29 }
 0xeed   :  { %p3416_p10 = scmp.ne.s32.totalorder %s2549_s29, %s3415_s6  ;;  %p3421_p12 = scmp.lt.s32.totalorder %s3415_s6, %s3415_s6 }
 0xeef   :  { %p3422_p13 = por %p3421_p12, %p3420_p11 }
 0xef1   :  { %p3423_p0 = pnand %p3422_p13, %p3416_p10 }
 0xf4d   :  { %v841_v7 = vpop.permute.xlu0 %840 }
 0xf4e   :  { %v843_v10 = vmul.f32 %v3248_v6, %v841_v7 }
 0xf50   :  { %845 = vrot.lane.b32.xlu1 %v843_v10, %s3474_s21 }
 0xfc2   :  { %v846_v9 = vpop.permute.xlu1 %845 }
 0xfc3   :  { %v848_v57 = vadd.f32 %v846_v9, %v838_v8 }
 0xfc5   :  { %3249 = vtanh.f32 %v848_v57 }
 0xfcf   :  { %v3250_v15 = vpop.eup %3249 }
 0xfd0   :  { %851 = vrot.lane.b32.xlu0 %v3250_v15, %s3473_s2 }
0x1042   :  { %v852_v16 = vpop.permute.xlu0 %851 }
0x1043   :  { %v854_v17 = vmul.f32 %v3248_v6, %v852_v16 }
0x1045   :  { %856 = vrot.lane.b32.xlu1 %v854_v17, %s3474_s21 }
0x10b7   :  { %v857_v21 = vpop.permute.xlu1 %856 }
0x10b8   :  { %859 = vst.msk [vmem:[#allocation3 + $0x28] sm:$0xff] %vm241_vm3, %v857_v21  ;;  %2871 = vmatmul.mubr.msk.f32.vlgmr.msra.gmra.mrb[12].mxu0 %vm241_vm3, %v857_v21 }
0x10b9   :  { %3102 = vmatpush3.bf16.msra.mxu0 %v3099_v14  ;;  %2892 = vmatprep.mubr.msk.f32.mxu0 %vm241_vm3, %v1072_v22 }
0x10ba   :  { %3104 = vmatprep.subr.bf16.mxu0 %v3103_v20 }
0x10bd   :  { %3106 = vmatpush3.bf16.msra.mxu0 %v3103_v20 }
0x10be   :  { %3119 = vmatprep.subr.bf16.mxu0 %v3470_v0 }
0x10bf   :  { %v1077_v27 = vld [vmem:[#allocation3 + $0x28] sm:$0xff] }
0x10c0   :  { %2893 = vmatmul.mubr.msk.f32.vlgmr.msra.gmra.mrb[14].mxu0 %vm241_vm3, %v1073_v23 }
0x10c1   :  { %2895 = vmatprep.mubr.msk.f32.mxu0 %vm241_vm3, %v1074_v24  ;;  %3121 = vmatpush3.bf16.msra.mxu0 %v3786_v50 }
0x10c2   :  { %3122 = vmatprep.subr.bf16.mxu0 %v3470_v0 }
0x10c4   :  { %2896 = vmatmul.mubr.msk.f32.gmra.mrb[16].mxu0 %vm241_vm3, %v1075_v25 }
0x10c5   :  { %2898 = vmatprep.mubr.msk.f32.mxu0 %vm241_vm3, %v1076_v26  ;;  %3124 = vmatpush3.bf16.msra.mxu0 %v3796_v53 }
0x10c6   :  { %3131 = vmatprep.subr.bf16.mxu0 %v3470_v0 }
0x10c8   :  { %2899 = vmatmul.mubr.msk.f32.gmra.mrb[18].mxu0 %vm241_vm3, %v1077_v27 }
0x118b   :  { %v929_v29 = vpop.f32.mrb[12].mxu0 }
0x118c   :  { %v933_v30 = vadd.f32 %v929_v29, %v220_v28  ;;  %v2872_v31 = vpop.f32.mrb[13].mxu0 }
0x118e   :  { %3251 = vtanh.f32 %v933_v30  ;;  %v2601_v39 = vmul.f32 -1.442695, %v933_v30 }
0x1190   :  { %3253 = vpow2.f32 %v2601_v39 }
0x1193   :  { %v3764_v32 = vpop.f32.mrb[14].mxu0 }
0x1194   :  { %v1181_v33 = vpop.f32.mrb[15].mxu0 }
0x1195   :  { %v1182_v3 = vadd.f32 %v3819_v5, %v1181_v33 }
0x1197   :  { %v3766_v34 = vpop.f32.mrb[16].mxu0 }
0x1198   :  { %v3252_v35 = vpop.eup %3251  ;;  %v3768_v36 = vpop.f32.mrb[17].mxu0 }
0x1199   :  { %943 = vrot.lane.b32.xlu0 %v3252_v35, %s3473_s2  ;;  %v1187_v35 = vadd.f32 %v3764_v32, %v3819_v5 }
0x119a   :  { %v3254_v60 = vpop.eup %3253 }
0x119b   :  { %v3771_v37 = vpop.f32.mrb[18].mxu0  ;;  %v937_v40 = vadd.f32 1.0, %v3254_v60 }
0x119c   :  { %v3773_v38 = vpop.f32.mrb[19].mxu0 }
0x119d   :  { %3255 = vrcp.f32 %v937_v40 }
0x11a7   :  { %v3256_v41 = vpop.eup %3255 }
0x11a8   :  { %v941_v44 = vmul.f32 %v3256_v41, %v848_v57 }
0x120b   :  { %v944_v42 = vpop.permute.xlu0 %943 }
0x120c   :  { %v946_v43 = vmul.f32 %v3256_v41, %v944_v42 }
0x120e   :  { %948 = vrot.lane.b32.xlu1 %v946_v43, %s3474_s21 }
0x1280   :  { %v949_v45 = vpop.permute.xlu1 %948 }
0x1281   :  { %v3776_v46 = vadd.f32 %v949_v45, %v941_v44 }
0x1283   :  { %3257 = vtanh.f32 %v3776_v46 }
0x128d   :  { %v3258_v47 = vpop.eup %3257 }
0x128e   :  { %954 = vrot.lane.b32.xlu0 %v3258_v47, %s3473_s2 }
0x1300   :  { %v955_v54 = vpop.permute.xlu0 %954 }
0x1301   :  { %v957_v55 = vmul.f32 %v3256_v41, %v955_v54 }
0x1303   :  { %959 = vrot.lane.b32.xlu1 %v957_v55, %s3474_s21 }
0x1375   :  { %v960_v56 = vpop.permute.xlu1 %959 }
0x1376   :  { %962 = vst.msk [vmem:[#allocation3 + $0x30] sm:$0xff] %vm241_vm3, %v960_v56  ;;  %2882 = vmatmul.mubr.msk.f32.vlgmr.msra.gmra.mrb[8].mxu1 %vm241_vm3, %v960_v56 }
0x1377   :  { %3109 = vmatpush3.bf16.msra.mxu1 %v3786_v50  ;;  %2912 = vmatprep.mubr.msk.f32.mxu1 %vm3471_vm0, %v3472_v1 }
0x1378   :  { %3110 = vmatprep.subr.bf16.mxu1 %v3470_v0 }
0x137b   :  { %3112 = vmatpush3.bf16.msra.mxu1 %v3796_v53 }
0x137c   :  { %3113 = vmatprep.subr.bf16.mxu1 %v3470_v0 }
0x137d   :  { %v1078_v58 = vld [vmem:[#allocation3 + $0x30] sm:$0xff] }
0x137e   :  { %2913 = vmatmul.mubr.f32.vlgmr.msra.gmra.mrb[10].mxu1 %v3472_v1  ;;  %2901 = vmatprep.mubr.msk.f32.mxu0 %vm241_vm3, %v1078_v58 }
0x137f   :  { %3115 = vmatpush3.bf16.msra.mxu1 %v3786_v50  ;;  %2923 = vmatprep.mubr.msk.f32.mxu1 %vm3471_vm0, %v3472_v1 }
0x1380   :  { %3116 = vmatprep.subr.bf16.mxu1 %v3470_v0 }
0x1383   :  { %3118 = vmatpush3.bf16.msra.mxu1 %v3796_v53 }
0x1384   :  { %3125 = vmatprep.subr.bf16.mxu1 %v3470_v0 }
0x1449   :  { %v1032_v62 = vpop.f32.mrb[8].mxu1 }
0x144a   :  { %v1036_v63 = vadd.f32 %v1032_v62, %v225_v61  ;;  %v2883_v2 = vpop.f32.mrb[9].mxu1 }
0x144c   :  { %v2603_v18 = vmul.f32 -1.442695, %v1036_v63 }
0x1451   :  { %v1299_v4 = vpop.f32.mrb[10].mxu1 }
0x1452   :  { %v1303_v6 = vadd.f32 %v1299_v4, %v1182_v3  ;;  %v2914_v7 = vpop.f32.mrb[11].mxu1 }
0x1454   :  { %3259 = vtanh.f32 %v1303_v6  ;;  %v2613_v8 = vmul.f32 -1.442695, %v1303_v6 }
0x1456   :  { %3261 = vpow2.f32 %v2613_v8 }
0x145e   :  { %v3260_v10 = vpop.eup %3259 }
0x145f   :  { %1313 = vrot.lane.b32.xlu0 %v3260_v10, %s3473_s2 }
0x1460   :  { %v3262_v9 = vpop.eup %3261 }
0x1461   :  { %v1307_v57 = vadd.f32 1.0, %v3262_v9 }
0x1463   :  { %3263 = vrcp.f32 %v1307_v57 }
0x146d   :  { %v3264_v12 = vpop.eup %3263 }
0x146e   :  { %v1311_v13 = vmul.f32 0.0, %v3264_v12 }
0x14d1   :  { %v1314_v59 = vpop.permute.xlu0 %1313 }
0x14d2   :  { %v1316_v11 = vmul.f32 %v3264_v12, %v1314_v59 }
0x14d4   :  { %1318 = vrot.lane.b32.xlu1 %v1316_v11, %s3474_s21 }
0x1546   :  { %v1319_v14 = vpop.permute.xlu1 %1318 }
0x1547   :  { %v1321_v15 = vadd.f32 %v1319_v14, %v1311_v13 }
0x1549   :  { %3265 = vtanh.f32 %v1321_v15 }
0x154a   :  { %3267 = vtanh.f32 %v1036_v63  ;;  %v1192_v63 = vadd.f32 %v3819_v5, %v3768_v36 }
0x154b   :  { %3269 = vpow2.f32 %v2603_v18 }
0x1553   :  { %v3266_v16 = vpop.eup %3265 }
0x1554   :  { %1324 = vrot.lane.b32.xlu0 %v3266_v16, %s3473_s2  ;;  %v3268_v17 = vpop.eup %3267 }
0x1555   :  { %v3270_v19 = vpop.eup %3269 }
0x1556   :  { %v1040_v20 = vadd.f32 1.0, %v3270_v19 }
0x1558   :  { %1046 = vrot.lane.b32.xlu0 %v3268_v17, %s3473_s2  ;;  %3271 = vrcp.f32 %v1040_v20  ;;  %v1197_v17 = vadd.f32 %v3766_v34, %v3819_v5 }
0x1562   :  { %v3272_v23 = vpop.eup %3271 }
0x1563   :  { %v1044_v27 = vmul.f32 %v3272_v23, %v3776_v46 }
0x15c6   :  { %v1325_v21 = vpop.permute.xlu0 %1324 }
0x15c7   :  { %v1327_v22 = vmul.f32 %v3264_v12, %v1325_v21 }
0x15c9   :  { %1329 = vrot.lane.b32.xlu1 %v1327_v22, %s3474_s21 }
0x15ca   :  { %v1047_v24 = vpop.permute.xlu0 %1046 }
0x15cb   :  { %v1049_v25 = vmul.f32 %v3272_v23, %v1047_v24 }
0x15cd   :  { %1051 = vrot.lane.b32.xlu0 %v1049_v25, %s3474_s21 }
0x163b   :  { %v1330_v26 = vpop.permute.xlu1 %1329 }
0x163c   :  { %1332 = vst.msk [vmem:[#allocation4] sm:$0xff] %vm241_vm3, %v1330_v26  ;;  %2924 = vmatmul.mubr.msk.f32.vlgmr.msra.gmra.mrb[12].mxu1 %vm241_vm3, %v1330_v26 }
0x163d   :  { %3127 = vmatpush3.bf16.msra.mxu1 %v3786_v50  ;;  %2945 = vmatprep.mubr.msk.f32.mxu1 %vm3471_vm0, %v3472_v1 }
0x163e   :  { %3128 = vmatprep.subr.bf16.mxu1 %v3470_v0 }
0x163f   :  { %v1052_v28 = vpop.permute.xlu0 %1051 }
0x1640   :  { %v3835_v29 = vadd.f32 %v1052_v28, %v1044_v27 }
0x1641   :  { %3130 = vmatpush3.bf16.msra.mxu1 %v3796_v53 }
0x1642   :  { %3273 = vtanh.f32 %v3835_v29  ;;  %3137 = vmatprep.subr.bf16.mxu1 %v3470_v0 }
0x164c   :  { %v3274_v30 = vpop.eup %3273 }
0x164d   :  { %1057 = vrot.lane.b32.xlu0 %v3274_v30, %s3473_s2 }
0x16bf   :  { %v1058_v31 = vpop.permute.xlu0 %1057 }
0x16c0   :  { %v1060_v33 = vmul.f32 %v3272_v23, %v1058_v31 }
0x16c2   :  { %1062 = vrot.lane.b32.xlu0 %v1060_v33, %s3474_s21 }
0x170f   :  { %v1402_v39 = vpop.f32.mrb[12].mxu1 }
0x1710   :  { %v1406_v60 = vadd.f32 %v1402_v39, %v1187_v35  ;;  %v2925_v40 = vpop.f32.mrb[13].mxu1 }
0x1712   :  { %3275 = vtanh.f32 %v1406_v60  ;;  %v2615_v44 = vmul.f32 -1.442695, %v1406_v60  ;;  %v1202_v60 = vadd.f32 %v3819_v5, %v3773_v38 }
0x1714   :  { %3277 = vpow2.f32 %v2615_v44 }
0x171c   :  { %v3276_v41 = vpop.eup %3275 }
0x171d   :  { %1416 = vrot.lane.b32.xlu1 %v3276_v41, %s3473_s2 }
0x171e   :  { %v3278_v32 = vpop.eup %3277 }
0x171f   :  { %v1410_v45 = vadd.f32 1.0, %v3278_v32 }
0x1721   :  { %3279 = vrcp.f32 %v1410_v45 }
0x172b   :  { %v3280_v46 = vpop.eup %3279 }
0x172c   :  { %v1414_v49 = vmul.f32 %v3280_v46, %v1321_v15 }
0x1734   :  { %v1063_v42 = vpop.permute.xlu0 %1062 }
0x1735   :  { %1065 = vst.msk [vmem:[#allocation3 + $0x38] sm:$0xff] %vm241_vm3, %v1063_v42  ;;  %1066 = vst.msk [vmem:[#allocation11] sm:$0xff] %vm241_vm3, %v1063_v42 }
0x173c   :  { %v1079_v43 = vld [vmem:[#allocation3 + $0x38] sm:$0xff] }
0x173d   :  { %2902 = vmatmul.mubr.msk.f32.gmra.mrb[20].mxu0 %vm241_vm3, %v1079_v43 }
0x173e   :  { %2934 = vmatprep.mubr.msk.f32.mxu0 %vm3471_vm0, %v3472_v1 }
0x178f   :  { %v1417_v47 = vpop.permute.xlu1 %1416 }
0x1790   :  { %v1419_v48 = vmul.f32 %v3280_v46, %v1417_v47 }
0x1792   :  { %1421 = vrot.lane.b32.xlu1 %v1419_v48, %s3474_s21 }
0x1804   :  { %v1422_v51 = vpop.permute.xlu1 %1421 }
0x1805   :  { %v1424_v52 = vadd.f32 %v1422_v51, %v1414_v49 }
0x1807   :  { %3281 = vtanh.f32 %v1424_v52 }
0x1810   :  { %v3851_v54 = vpop.f32.mrb[20].mxu0 }
0x1811   :  { %v3282_v55 = vpop.eup %3281  ;;  %v3853_v56 = vpop.f32.mrb[21].mxu0 }
0x1812   :  { %1427 = vrot.lane.b32.xlu1 %v3282_v55, %s3473_s2 }
0x1884   :  { %v1428_v58 = vpop.permute.xlu1 %1427 }
0x1885   :  { %v1430_v61 = vmul.f32 %v3280_v46, %v1428_v58 }
0x1887   :  { %1432 = vrot.lane.b32.xlu1 %v1430_v61, %s3474_s21 }
0x18f9   :  { %v1433_v62 = vpop.permute.xlu1 %1432 }
0x18fa   :  { %1435 = vst.msk [vmem:[#allocation4 + $0x8] sm:$0xff] %vm241_vm3, %v1433_v62  ;;  %2935 = vmatmul.mubr.msk.f32.vlgmr.msra.gmra.mrb[22].mxu0 %vm241_vm3, %v1433_v62  ;;  %v1207_v62 = vadd.f32 %v3771_v37, %v3819_v5 }
0x18fb   :  { %3133 = vmatpush3.bf16.msra.mxu0 %v3786_v50  ;;  %2956 = vmatprep.mubr.msk.f32.mxu0 %vm3471_vm0, %v3472_v1 }
0x18fc   :  { %3134 = vmatprep.subr.bf16.mxu0 %v3470_v0 }
0x18ff   :  { %3136 = vmatpush3.bf16.msra.mxu0 %v3796_v53 }
0x1900   :  { %3143 = vmatprep.subr.bf16.mxu0 %v3470_v0 }
0x19cd   :  { %v1505_v2 = vpop.f32.mrb[22].mxu0 }
0x19ce   :  { %v1509_v3 = vadd.f32 %v1505_v2, %v1192_v63  ;;  %v2936_v4 = vpop.f32.mrb[23].mxu0 }
0x19d0   :  { %3283 = vtanh.f32 %v1509_v3  ;;  %v2617_v7 = vmul.f32 -1.442695, %v1509_v3 }
0x19d2   :  { %3285 = vpow2.f32 %v2617_v7 }
0x19da   :  { %v3284_v6 = vpop.eup %3283 }
0x19db   :  { %1519 = vrot.lane.b32.xlu0 %v3284_v6, %s3473_s2 }
0x19dc   :  { %v3286_v10 = vpop.eup %3285 }
0x19dd   :  { %v1513_v8 = vadd.f32 1.0, %v3286_v10 }
0x19df   :  { %3287 = vrcp.f32 %v1513_v8 }
0x19e9   :  { %v3288_v9 = vpop.eup %3287 }
0x19ea   :  { %v1517_v59 = vmul.f32 %v3288_v9, %v1424_v52 }
0x1a4d   :  { %v1520_v57 = vpop.permute.xlu0 %1519 }
0x1a4e   :  { %v1522_v12 = vmul.f32 %v3288_v9, %v1520_v57 }
0x1a50   :  { %1524 = vrot.lane.b32.xlu1 %v1522_v12, %s3474_s21  ;;  %v2068_v12 = vld [vmem:[%s4153_s7] sm:$0xff] }
0x1ac2   :  { %v1525_v11 = vpop.permute.xlu1 %1524 }
0x1ac3   :  { %v1527_v36 = vadd.f32 %v1525_v11, %v1517_v59  ;;  %v2069_v59 = vld [vmem:[%s4153_s7 + $0x8] sm:$0xff] }
0x1ac4   :  { %v3155_v11 = vpack.c.bf16 %v2069_v59, %v2068_v12  ;;  %v1217_v59 = vadd.f32 %v3851_v54, %v3819_v5 }
0x1ac5   :  { %3289 = vtanh.f32 %v1527_v36 }
0x1acf   :  { %v3290_v13 = vpop.eup %3289 }
0x1ad0   :  { %1530 = vrot.lane.b32.xlu0 %v3290_v13, %s3473_s2 }
0x1b42   :  { %v1531_v14 = vpop.permute.xlu0 %1530 }
0x1b43   :  { %v1533_v15 = vmul.f32 %v3288_v9, %v1531_v14 }
0x1b45   :  { %1535 = vrot.lane.b32.xlu1 %v1533_v15, %s3474_s21  ;;  %v2070_v15 = vld [vmem:[%s4153_s7 + $0x10] sm:$0xff] }
0x1bb7   :  { %v1536_v16 = vpop.permute.xlu1 %1535 }
0x1bb8   :  { %1538 = vst.msk [vmem:[#allocation4 + $0x10] sm:$0xff] %vm241_vm3, %v1536_v16  ;;  %2946 = vmatmul.mubr.msk.f32.vlgmr.msra.gmra.mrb[14].mxu1 %vm241_vm3, %v1536_v16  ;;  %v2071_v16 = vld [vmem:[%s4153_s7 + $0x18] sm:$0xff] }
0x1bb9   :  { %3139 = vmatpush3.bf16.msra.mxu1 %v3786_v50  ;;  %2967 = vmatprep.mubr.msk.f32.mxu1 %vm3471_vm0, %v3472_v1 }
0x1bba   :  { %3140 = vmatprep.subr.bf16.mxu1 %v3470_v0 }
0x1bbd   :  { %3142 = vmatpush3.bf16.msra.mxu1 %v3796_v53 }
0x1bbe   :  { %3149 = vmatprep.subr.bf16.mxu1 %v3470_v0 }
0x1c8b   :  { %v1608_v18 = vpop.f32.mrb[14].mxu1 }
0x1c8c   :  { %v1612_v19 = vadd.f32 %v1608_v18, %v1197_v17  ;;  %v2947_v20 = vpop.f32.mrb[15].mxu1  ;;  %v3159_v17 = vpack.c.bf16 %v2071_v16, %v2070_v15 }
0x1c8d   :  { %v2061_v20 = vld [vmem:[#allocation4 + $0x8] sm:$0xff] }
0x1c8e   :  { %3291 = vtanh.f32 %v1612_v19  ;;  %v2619_v22 = vmul.f32 -1.442695, %v1612_v19  ;;  %v2060_v19 = vld [vmem:[#allocation4] sm:$0xff] }
0x1c90   :  { %3293 = vpow2.f32 %v2619_v22 }
0x1c98   :  { %v3292_v21 = vpop.eup %3291 }
0x1c99   :  { %1622 = vrot.lane.b32.xlu0 %v3292_v21, %s3473_s2  ;;  %v2062_v21 = vld [vmem:[#allocation4 + $0x10] sm:$0xff] }
0x1c9a   :  { %v3294_v23 = vpop.eup %3293 }
0x1c9b   :  { %v1616_v24 = vadd.f32 1.0, %v3294_v23 }
0x1c9d   :  { %3295 = vrcp.f32 %v1616_v24 }
0x1ca7   :  { %v3296_v25 = vpop.eup %3295 }
0x1ca8   :  { %v1620_v28 = vmul.f32 %v3296_v25, %v1527_v36 }
0x1d0b   :  { %v1623_v26 = vpop.permute.xlu0 %1622 }
0x1d0c   :  { %v1625_v27 = vmul.f32 %v3296_v25, %v1623_v26 }
0x1d0e   :  { %1627 = vrot.lane.b32.xlu1 %v1625_v27, %s3474_s21 }
0x1d80   :  { %v1628_v30 = vpop.permute.xlu1 %1627 }
0x1d81   :  { %v1630_v34 = vadd.f32 %v1628_v30, %v1620_v28 }
0x1d83   :  { %3297 = vtanh.f32 %v1630_v34 }
0x1d8d   :  { %v3298_v31 = vpop.eup %3297 }
0x1d8e   :  { %1633 = vrot.lane.b32.xlu0 %v3298_v31, %s3473_s2 }
0x1e00   :  { %v1634_v33 = vpop.permute.xlu0 %1633 }
0x1e01   :  { %v1636_v35 = vmul.f32 %v3296_v25, %v1634_v33  ;;  %v1212_v25 = vadd.f32 %v3819_v5, %v3853_v56 }
0x1e03   :  { %1638 = vrot.lane.b32.xlu1 %v1636_v35, %s3474_s21 }
0x1e75   :  { %v1639_v39 = vpop.permute.xlu1 %1638 }
0x1e76   :  { %1641 = vst.msk [vmem:[#allocation4 + $0x18] sm:$0xff] %vm241_vm3, %v1639_v39  ;;  %2957 = vmatmul.mubr.msk.f32.vlgmr.msra.gmra.mrb[24].mxu0 %vm241_vm3, %v1639_v39 }
0x1e77   :  { %3145 = vmatpush3.bf16.msra.mxu0 %v3786_v50  ;;  %2978 = vmatprep.mubr.msk.f32.mxu0 %vm3471_vm0, %v3472_v1 }
0x1e78   :  { %3146 = vmatprep.subr.bf16.mxu0 %v3470_v0 }
0x1e7b   :  { %3148 = vmatpush3.bf16.msra.mxu0 %v3796_v53 }
0x1e7c   :  { %3156 = vmatprep.subr.bf16.mxu0 %v3155_v11 }
0x1e7d   :  { %v2063_v22 = vld [vmem:[#allocation4 + $0x18] sm:$0xff] }
0x1f49   :  { %v1711_v40 = vpop.f32.mrb[24].mxu0 }
0x1f4a   :  { %v1715_v41 = vadd.f32 %v1711_v40, %v1202_v60  ;;  %v2958_v42 = vpop.f32.mrb[25].mxu0 }
0x1f4c   :  { %3299 = vtanh.f32 %v1715_v41  ;;  %v2621_v44 = vmul.f32 -1.442695, %v1715_v41 }
0x1f4e   :  { %3301 = vpow2.f32 %v2621_v44 }
0x1f56   :  { %v3300_v43 = vpop.eup %3299 }
0x1f57   :  { %1725 = vrot.lane.b32.xlu0 %v3300_v43, %s3473_s2 }
0x1f58   :  { %v3302_v32 = vpop.eup %3301 }
0x1f59   :  { %v1719_v45 = vadd.f32 1.0, %v3302_v32 }
0x1f5b   :  { %3303 = vrcp.f32 %v1719_v45 }
0x1f65   :  { %v3304_v46 = vpop.eup %3303 }
0x1f66   :  { %v1723_v49 = vmul.f32 %v3304_v46, %v1630_v34 }
0x1fc9   :  { %v1726_v47 = vpop.permute.xlu0 %1725 }
0x1fca   :  { %v1728_v48 = vmul.f32 %v3304_v46, %v1726_v47  ;;  %v2216_v47 = vld [vmem:[%s4155_s9] sm:$0xff] }
0x1fcc   :  { %1730 = vrot.lane.b32.xlu1 %v1728_v48, %s3474_s21  ;;  %v2217_v48 = vld [vmem:[%s4155_s9 + $0x8] sm:$0xff] }
0x203e   :  { %v1731_v51 = vpop.permute.xlu1 %1730 }
0x203f   :  { %v1733_v38 = vadd.f32 %v1731_v51, %v1723_v49  ;;  %v3163_v49 = vpack.c.bf16 %v2217_v48, %v2216_v47 }
0x2041   :  { %3305 = vtanh.f32 %v1733_v38 }
0x204b   :  { %v3306_v52 = vpop.eup %3305 }
0x204c   :  { %1736 = vrot.lane.b32.xlu0 %v3306_v52, %s3473_s2 }
0x20be   :  { %v1737_v55 = vpop.permute.xlu0 %1736 }
0x20bf   :  { %v1739_v58 = vmul.f32 %v3304_v46, %v1737_v55  ;;  %v3950_v55 = vld [vmem:[%s4154_s8] ss:$0 sm:$0xff]  ;;  %s3475_s8 = smov 8  }
0x20c1   :  { %1741 = vrot.lane.b32.xlu1 %v1739_v58, %s3474_s21 }
0x2133   :  { %v1742_v61 = vpop.permute.xlu1 %1741 }
0x2134   :  { %1744 = vst.msk [vmem:[#allocation4 + $0x20] sm:$0xff] %vm241_vm3, %v1742_v61  ;;  %2968 = vmatmul.mubr.msk.f32.vlgmr.msra.gmra.mrb[16].mxu1 %vm241_vm3, %v1742_v61  ;;  %v2218_v61 = vld [vmem:[%s4155_s9 + $0x10] sm:$0xff] }
0x2135   :  { %3151 = vmatpush3.bf16.msra.mxu1 %v3786_v50  ;;  %2989 = vmatprep.mubr.msk.f32.mxu1 %vm3471_vm0, %v3472_v1 }
0x2136   :  { %3152 = vmatprep.subr.bf16.mxu1 %v3470_v0 }
0x2139   :  { %3154 = vmatpush3.bf16.msra.mxu1 %v3796_v53 }
0x213a   :  { %3164 = vmatprep.subr.bf16.mxu1 %v3163_v49 }
0x213b   :  { %v2064_v23 = vld [vmem:[#allocation4 + $0x20] sm:$0xff] }
0x2207   :  { %v1814_v63 = vpop.f32.mrb[16].mxu1 }
0x2208   :  { %v1818_v2 = vadd.f32 %v1814_v63, %v1207_v62  ;;  %v2969_v3 = vpop.f32.mrb[17].mxu1  ;;  %v2219_v62 = vld [vmem:[%s4155_s9 + $0x18] sm:$0xff]  ;;  %s3476_s9 = smov 16  }
0x2209   :  { %v3167_v63 = vpack.c.bf16 %v2219_v62, %v2218_v61 }
0x220a   :  { %3307 = vtanh.f32 %v1818_v2  ;;  %v2623_v6 = vmul.f32 -1.442695, %v1818_v2 }
0x220c   :  { %3309 = vpow2.f32 %v2623_v6 }
0x2214   :  { %v3308_v4 = vpop.eup %3307 }
0x2215   :  { %1828 = vrot.lane.b32.xlu0 %v3308_v4, %s3473_s2 }
0x2216   :  { %v3310_v50 = vpop.eup %3309 }
0x2217   :  { %v1822_v7 = vadd.f32 1.0, %v3310_v50 }
0x2219   :  { %3311 = vrcp.f32 %v1822_v7 }
0x2223   :  { %v3312_v10 = vpop.eup %3311 }
0x2224   :  { %v1826_v53 = vmul.f32 %v3312_v10, %v1733_v38 }
0x2287   :  { %v1829_v8 = vpop.permute.xlu0 %1828 }
0x2288   :  { %v1831_v9 = vmul.f32 %v3312_v10, %v1829_v8 }
0x228a   :  { %1833 = vrot.lane.b32.xlu1 %v1831_v9, %s3474_s21 }
0x22fc   :  { %v1834_v57 = vpop.permute.xlu1 %1833 }
0x22fd   :  { %v1836_v37 = vadd.f32 %v1834_v57, %v1826_v53 }
0x22ff   :  { %3313 = vtanh.f32 %v1836_v37 }
0x2309   :  { %v3314_v36 = vpop.eup %3313 }
0x230a   :  { %1839 = vrot.lane.b32.xlu0 %v3314_v36, %s3473_s2 }
0x237c   :  { %v1840_v13 = vpop.permute.xlu0 %1839 }
0x237d   :  { %v1842_v14 = vmul.f32 %v3312_v10, %v1840_v13 }
0x237f   :  { %1844 = vrot.lane.b32.xlu1 %v1842_v14, %s3474_s21 }
0x23f1   :  { %v1845_v18 = vpop.permute.xlu1 %1844 }
0x23f2   :  { %1847 = vst.msk [vmem:[#allocation4 + $0x28] sm:$0xff] %vm241_vm3, %v1845_v18  ;;  %2979 = vmatmul.mubr.msk.f32.vlgmr.msra.gmra.mrb[26].mxu0 %vm241_vm3, %v1845_v18 }
0x23f3   :  { %3158 = vmatpush3.bf16.msra.mxu0 %v3155_v11  ;;  %3000 = vmatprep.mubr.msk.f32.mxu0 %vm241_vm3, %v2060_v19 }
0x23f4   :  { %3160 = vmatprep.subr.bf16.mxu0 %v3159_v17 }
0x23f7   :  { %3162 = vmatpush3.bf16.msra.mxu0 %v3159_v17 }
0x23f8   :  { %3171 = vmatprep.subr.bf16.mxu0 %v3470_v0 }
0x23f9   :  { %v2065_v24 = vld [vmem:[#allocation4 + $0x28] sm:$0xff] }
0x23fa   :  { %3001 = vmatmul.mubr.msk.f32.vlgmr.msra.gmra.mrb[28].mxu0 %vm241_vm3, %v2061_v20 }
0x23fb   :  { %3003 = vmatprep.mubr.msk.f32.mxu0 %vm241_vm3, %v2062_v21 }
0x23fe   :  { %3004 = vmatmul.mubr.msk.f32.gmra.mrb[30].mxu0 %vm241_vm3, %v2063_v22 }
0x23ff   :  { %3006 = vmatprep.mubr.msk.f32.mxu0 %vm241_vm3, %v2064_v23 }
0x2402   :  { %3007 = vmatmul.mubr.msk.f32.gmra.mrb[32].mxu0 %vm241_vm3, %v2065_v24 }
0x24c5   :  { %v1917_v26 = vpop.f32.mrb[26].mxu0 }
0x24c6   :  { %v1921_v27 = vadd.f32 %v1917_v26, %v1212_v25  ;;  %v2980_v28 = vpop.f32.mrb[27].mxu0 }
0x24c8   :  { %3315 = vtanh.f32 %v1921_v27  ;;  %v2625_v40 = vmul.f32 -1.442695, %v1921_v27 }
0x24ca   :  { %3317 = vpow2.f32 %v2625_v40 }
0x24cd   :  { %v3002_v30 = vpop.f32.mrb[28].mxu0 }
0x24ce   :  { %v2169_v34 = vpop.f32.mrb[29].mxu0  ;;  %v2175_v4 = vadd.f32 %v3002_v30, %v3950_v55  ;;  %v2406_v30 = vlaneseq }
0x24cf   :  { %v2170_v58 = vadd.f32 %v3950_v55, %v2169_v34 }
0x24d0   :  { %v2209_v50 = vmax.f32 %v2175_v4, 0.0  ;;  %v2407_v34 = vshrl.u32 %v2406_v30, 7 }
0x24d1   :  { %v3005_v31 = vpop.f32.mrb[30].mxu0  ;;  %v2208_v2 = vmax.f32 %v2170_v58, 0.0 }
0x24d2   :  { %v3316_v33 = vpop.eup %3315  ;;  %v2179_v35 = vpop.f32.mrb[31].mxu0  ;;  %v2185_v7 = vadd.f32 %v3005_v31, %v3950_v55  ;;  %v2409_v31 = vand.u32 127, %v2406_v30 }
0x24d3   :  { %1931 = vrot.lane.b32.xlu0 %v3316_v33, %s3473_s2  ;;  %v2180_v6 = vadd.f32 %v3950_v55, %v2179_v35 }
0x24d4   :  { %v3318_v41 = vpop.eup %3317  ;;  %v2211_v53 = vmax.f32 %v2185_v7, 0.0  ;;  %vm2410_vm4 = vcmp.eq.s32.totalorder %v2407_v34, %v2409_v31 }
0x24d5   :  { %v3008_v39 = vpop.f32.mrb[32].mxu0  ;;  %v1925_v42 = vadd.f32 1.0, %v3318_v41  ;;  %v2210_v10 = vmax.f32 %v2180_v6, 0.0 }
0x24d6   :  { %v2189_v60 = vpop.f32.mrb[33].mxu0  ;;  %v2195_v57 = vadd.f32 %v3008_v39, %v3950_v55  ;;  %v2646_v39 = vsel %vm2410_vm4, 1.0, %v3472_v1 }
0x24d7   :  { %3319 = vrcp.f32 %v1925_v42  ;;  %v2190_v8 = vadd.f32 %v3950_v55, %v2189_v60 }
0x24d8   :  { %v2213_v12 = vmax.f32 %v2195_v57, 0.0 }
0x24e1   :  { %v3320_v43 = vpop.eup %3319 }
0x24e2   :  { %v1929_v32 = vmul.f32 %v3320_v43, %v1836_v37  ;;  %v2212_v37 = vmax.f32 %v2190_v8, 0.0 }
0x2545   :  { %v1932_v56 = vpop.permute.xlu0 %1931 }
0x2546   :  { %v1934_v44 = vmul.f32 %v3320_v43, %v1932_v56 }
0x2548   :  { %1936 = vrot.lane.b32.xlu1 %v1934_v44, %s3474_s21 }
0x25ba   :  { %v1937_v45 = vpop.permute.xlu1 %1936 }
0x25bb   :  { %v3936_v46 = vadd.f32 %v1937_v45, %v1929_v32 }
0x25bd   :  { %3321 = vtanh.f32 %v3936_v46 }
0x25c7   :  { %v3322_v51 = vpop.eup %3321 }
0x25c8   :  { %1942 = vrot.lane.b32.xlu0 %v3322_v51, %s3473_s2 }
0x263a   :  { %v1943_v38 = vpop.permute.xlu0 %1942 }
0x263b   :  { %v1945_v52 = vmul.f32 %v3320_v43, %v1943_v38 }
0x263d   :  { %1947 = vrot.lane.b32.xlu1 %v1945_v52, %s3474_s21 }
0x26af   :  { %v1948_v3 = vpop.permute.xlu1 %1947 }
0x26b0   :  { %1950 = vst.msk [vmem:[#allocation4 + $0x30] sm:$0xff] %vm241_vm3, %v1948_v3  ;;  %2990 = vmatmul.mubr.msk.f32.vlgmr.msra.gmra.mrb[18].mxu1 %vm241_vm3, %v1948_v3  ;;  %v2637_v3 = vld [vmem:[%s4156_s10] ss:$0 sm:$0xff] }
0x26b1   :  { %3166 = vmatpush3.bf16.msra.mxu1 %v3163_v49  ;;  %3020 = vmatprep.mubr.msk.f32.mxu1 %vm241_vm3, %v2208_v2 }
0x26b2   :  { %3168 = vmatprep.subr.bf16.mxu1 %v3167_v63 }
0x26b5   :  { %3170 = vmatpush3.bf16.msra.mxu1 %v3167_v63 }
0x26b7   :  { %v2066_v9 = vld [vmem:[#allocation4 + $0x30] sm:$0xff] }
0x26b8   :  { %3021 = vmatmul.mubr.msk.f32.vlgmr.msra.gmra.mrb[20].mxu1 %vm241_vm3, %v2209_v50  ;;  %3009 = vmatprep.mubr.msk.f32.mxu0 %vm241_vm3, %v2066_v9 }
0x26b9   :  { %3023 = vmatprep.mubr.msk.f32.mxu1 %vm241_vm3, %v2210_v10 }
0x26bc   :  { %3024 = vmatmul.mubr.msk.f32.gmra.mrb[22].mxu1 %vm241_vm3, %v2211_v53 }
0x26bd   :  { %3026 = vmatprep.mubr.msk.f32.mxu1 %vm241_vm3, %v2212_v37 }
0x26c0   :  { %3027 = vmatmul.mubr.msk.f32.gmra.mrb[24].mxu1 %vm241_vm3, %v2213_v12 }
0x2783   :  { %v2020_v11 = vpop.f32.mrb[18].mxu1 }
0x2784   :  { %v2024_v36 = vadd.f32 %v2020_v11, %v1217_v59  ;;  %v2991_v13 = vpop.f32.mrb[19].mxu1 }
0x2786   :  { %3323 = vtanh.f32 %v2024_v36  ;;  %v2627_v5 = vmul.f32 -1.442695, %v2024_v36 }
0x2788   :  { %3325 = vpow2.f32 %v2627_v5 }
0x278b   :  { %v3975_v14 = vpop.f32.mrb[20].mxu1 }
0x278c   :  { %v3977_v15 = vpop.f32.mrb[21].mxu1  ;;  %v4023_v50 = vadd.f32 %v3975_v14, %v2637_v3 }
0x278e   :  { %v2358_v12 = vsel %vm2356_vm11, %v4023_v50, -inf }
0x278f   :  { %v3979_v16 = vpop.f32.mrb[22].mxu1 }
0x2790   :  { %v3324_v17 = vpop.eup %3323  ;;  %v3981_v18 = vpop.f32.mrb[23].mxu1  ;;  %v4029_v7 = vadd.f32 %v3979_v16, %v2637_v3 }
0x2791   :  { %2034 = vrot.lane.b32.xlu0 %v3324_v17, %s3473_s2  ;;  %v4032_v10 = vadd.f32 %v2637_v3, %v3981_v18 }
0x2792   :  { %v3326_v54 = vpop.eup %3325  ;;  %v2360_v36 = vsel %vm2356_vm11, %v4029_v7, -inf }
0x2793   :  { %v3984_v19 = vpop.f32.mrb[24].mxu1  ;;  %v2028_v21 = vadd.f32 1.0, %v3326_v54  ;;  %v2359_v16 = vsel %vm2356_vm11, %v4032_v10, -inf }
0x2794   :  { %v3986_v20 = vpop.f32.mrb[25].mxu1  ;;  %v4017_v4 = vadd.f32 %v3984_v19, %v2637_v3 }
0x2795   :  { %3327 = vrcp.f32 %v2028_v21  ;;  %v4020_v6 = vadd.f32 %v2637_v3, %v3986_v20 }
0x2796   :  { %v2363_v8 = vsel %vm2356_vm11, %v4017_v4, -inf }
0x2797   :  { %v2361_v9 = vsel %vm2356_vm11, %v4020_v6, -inf }
0x279f   :  { %v3328_v22 = vpop.eup %3327 }
0x27a0   :  { %v2032_v25 = vmul.f32 %v3328_v22, %v3936_v46 }
0x2803   :  { %v2035_v23 = vpop.permute.xlu0 %2034 }
0x2804   :  { %v2037_v24 = vmul.f32 %v3328_v22, %v2035_v23 }
0x2806   :  { %2039 = vrot.lane.b32.xlu1 %v2037_v24, %s3474_s21 }
0x2878   :  { %v2040_v26 = vpop.permute.xlu1 %2039 }
0x2879   :  { %v3990_v27 = vadd.f32 %v2040_v26, %v2032_v25 }
0x287b   :  { %3329 = vtanh.f32 %v3990_v27 }
0x2885   :  { %v3330_v28 = vpop.eup %3329 }
0x2886   :  { %2045 = vrot.lane.b32.xlu0 %v3330_v28, %s3473_s2  ;;  %s3478_s2 = smov 40  }
0x28f8   :  { %v2046_v33 = vpop.permute.xlu0 %2045 }
0x28f9   :  { %v2048_v35 = vmul.f32 %v3328_v22, %v2046_v33 }
0x28fb   :  { %2050 = vrot.lane.b32.xlu1 %v2048_v35, %s3474_s21 }
0x28ff   :  { %2414 = vrot.lane.b32.xlu1 %v2646_v39, %s3475_s8 }
0x2903   :  { %2417 = vrot.lane.b32.xlu1 %v2646_v39, %s3476_s9 }
0x2907   :  { %2420 = vrot.lane.b32.xlu1 %v2646_v39, %s3477_s24 }
0x290b   :  { %2423 = vrot.lane.b32.xlu1 %v2646_v39, %s3474_s21 }
0x290f   :  { %2426 = vrot.lane.b32.xlu1 %v2646_v39, %s3478_s2 }
0x2913   :  { %2429 = vrot.lane.b32.xlu1 %v2646_v39, %s3479_s25 }
0x2917   :  { %2432 = vrot.lane.b32.xlu1 %v2646_v39, %s3480_s1 }
0x291b   :  { %1068 = vrot.lane.b32.xlu1 %v3835_v29, %s3481_s28 }
0x296d   :  { %v2051_v60 = vpop.permute.xlu1 %2050 }
0x296e   :  { %2053 = vst.msk [vmem:[#allocation4 + $0x38] sm:$0xff] %vm241_vm3, %v2051_v60  ;;  %2054 = vst.msk [vmem:[#allocation11 + $0x8] sm:$0xff] %vm241_vm3, %v2051_v60 }
0x2971   :  { %v2415_v40 = vpop.permute.xlu1 %2414 }
0x2972   :  { %v2436_v41 = vsel %vm2435_vm5, %v2646_v39, %v2415_v40 }
0x2975   :  { %v2418_v42 = vpop.permute.xlu1 %2417  ;;  %v2067_v43 = vld [vmem:[#allocation4 + $0x38] sm:$0xff] }
0x2976   :  { %v2438_v56 = vsel %vm2437_vm6, %v2436_v41, %v2418_v42  ;;  %3010 = vmatmul.mubr.msk.f32.gmra.mrb[34].mxu0 %vm241_vm3, %v2067_v43 }
0x2977   :  { %3048 = vmatprep.mubr.msk.f32.mxu0 %vm3471_vm0, %v3472_v1 }
0x2979   :  { %v2421_v44 = vpop.permute.xlu1 %2420 }
0x297a   :  { %v2440_v29 = vsel %vm2439_vm7, %v2438_v56, %v2421_v44 }
0x297d   :  { %v2424_v32 = vpop.permute.xlu1 %2423 }
0x297e   :  { %v2441_v45 = vsel %vm241_vm3, %v2440_v29, %v2424_v32 }
0x2981   :  { %v2427_v46 = vpop.permute.xlu1 %2426 }
0x2982   :  { %v2443_v47 = vsel %vm2442_vm8, %v2441_v45, %v2427_v46 }
0x2985   :  { %v2430_v48 = vpop.permute.xlu1 %2429 }
0x2986   :  { %v2445_v49 = vsel %vm2444_vm9, %v2443_v47, %v2430_v48 }
0x2989   :  { %v2433_v51 = vpop.permute.xlu1 %2432 }
0x298a   :  { %v4006_v38 = vsel %vm2446_vm10, %v2445_v49, %v2433_v51 }
0x298d   :  { %v1069_v52 = vpop.permute.xlu1 %1068 }
0x298e   :  { %1071 = vst.msk [vmem:[#allocation12] sm:$0xff] %vm241_vm3, %v1069_v52 }
0x2a49   :  { %v3011_v58 = vpop.f32.mrb[34].mxu0 }
0x2a4a   :  { %v2205_v1 = vadd.f32 %v3011_v58, %v3950_v55  ;;  %v2199_v61 = vpop.f32.mrb[35].mxu0 }
0x2a4b   :  { %v2200_v62 = vadd.f32 %v3950_v55, %v2199_v61  ;;  %v4026_v55 = vadd.f32 %v2637_v3, %v3977_v15  ;;  %v2364_v15 = vmax.f32 %v2358_v12, %v2363_v8 }
0x2a4c   :  { %v2215_v2 = vmax.f32 %v2205_v1, 0.0 }
0x2a4d   :  { %v2214_v63 = vmax.f32 %v2200_v62, 0.0  ;;  %v2357_v59 = vsel %vm2356_vm11, %v4026_v55, -inf }
0x2a4e   :  { %v2362_v14 = vmax.f32 %v2357_v59, %v2361_v9 }
0x2a4f   :  { %3029 = vmatprep.mubr.msk.f32.mxu1 %vm241_vm3, %v2214_v63 }
0x2a50   :  { %3030 = vmatmul.mubr.msk.f32.gmra.mrb[26].mxu1 %vm241_vm3, %v2215_v2  ;;  %v2369_v20 = vmax.f32 %v2362_v14, %v2364_v15 }
0x2b23   :  { %v3031_v53 = vpop.f32.mrb[26].mxu1 }
0x2b24   :  { %v4038_v57 = vadd.f32 %v3031_v53, %v2637_v3  ;;  %v2347_v37 = vpop.f32.mrb[27].mxu1 }
0x2b25   :  { %v4044_v11 = vadd.f32 %v2637_v3, %v2347_v37 }
0x2b26   :  { %v2367_v13 = vsel %vm2356_vm11, %v4038_v57, -inf }
0x2b27   :  { %v2365_v17 = vsel %vm2356_vm11, %v4044_v11, -inf  ;;  %v2368_v18 = vmax.f32 %v2360_v36, %v2367_v13 }
0x2b28   :  { %v2366_v19 = vmax.f32 %v2359_v16, %v2365_v17 }
0x2b2a   :  { %v2370_v5 = vmax.f32 %v2366_v19, %v2368_v18 }
0x2b2c   :  { %v2371_v54 = vmax.f32 %v2369_v20, %v2370_v5 }
0x2b2e   :  { %2372 = vmax.xlane.f32.xlu0 %v2371_v54 }
0x2b44   :  { %2056 = vrot.lane.b32.xlu0 %v3990_v27, %s3481_s28 }
0x2bbb   :  { %v2373_v21 = vpop.xlane.xlu0 %2372 }
0x2bbc   :  { %v2374_v22 = vrot.slane %v2373_v21, 4 }
0x2bbe   :  { %v2375_v23 = vmax.f32 %v2373_v21, %v2374_v22 }
0x2bbf   :  { %v2057_v24 = vpop.permute.xlu0 %2056 }
0x2bc0   :  { %v2376_v25 = vrot.slane %v2375_v23, 2  ;;  %2059 = vst.msk [vmem:[#allocation12 + $0x8] sm:$0xff] %vm241_vm3, %v2057_v24 }
0x2bc2   :  { %v2377_v26 = vmax.f32 %v2375_v23, %v2376_v25 }
0x2bc4   :  { %v2378_v28 = vrot.slane %v2377_v26, 1 }
0x2bc6   :  { %v2379_v30 = vmax.f32 %v2377_v26, %v2378_v28 }
0x2bc8   :  { %3183 = vpush %v2379_v30 }
0x2bf9   :  { %s3184_s10 = spop %3183 }
0x2bfa   :  { %v4057_v34 = vstv %s3184_s10 }
0x2bfb   :  { %v2382_v31 = vsub.f32 %v4026_v55, %v4057_v34  ;;  %v2383_v27 = vsub.f32 %v4023_v50, %v4057_v34  ;;  %v2384_v33 = vsub.f32 %v4032_v10, %v4057_v34  ;;  %v2385_v35 = vsub.f32 %v4029_v7, %v4057_v34 }
0x2bfc   :  { %v2386_v41 = vsub.f32 %v4020_v6, %v4057_v34  ;;  %v2387_v43 = vsub.f32 %v4017_v4, %v4057_v34  ;;  %v2388_v44 = vsub.f32 %v4044_v11, %v4057_v34  ;;  %v2389_v32 = vsub.f32 %v4038_v57, %v4057_v34 }
0x2bfd   :  { %v2390_v39 = vmul.f32 1.442695, %v2382_v31  ;;  %v2392_v60 = vmul.f32 1.442695, %v2383_v27  ;;  %v2394_v40 = vmul.f32 1.442695, %v2384_v33 }
0x2bfe   :  { %v2396_v42 = vmul.f32 1.442695, %v2385_v35  ;;  %v2398_v56 = vmul.f32 1.442695, %v2386_v41  ;;  %v2400_v29 = vmul.f32 1.442695, %v2387_v43 }
0x2bff   :  { %3331 = vpow2.f32 %v2390_v39  ;;  %v2402_v45 = vmul.f32 1.442695, %v2388_v44  ;;  %v2404_v46 = vmul.f32 1.442695, %v2389_v32 }
0x2c00   :  { %3333 = vpow2.f32 %v2392_v60 }
0x2c01   :  { %3335 = vpow2.f32 %v2394_v40 }
0x2c02   :  { %3337 = vpow2.f32 %v2396_v42 }
0x2c03   :  { %3339 = vpow2.f32 %v2398_v56 }
0x2c04   :  { %3341 = vpow2.f32 %v2400_v29 }
0x2c05   :  { %3343 = vpow2.f32 %v2402_v45 }
0x2c06   :  { %3345 = vpow2.f32 %v2404_v46 }
0x2c09   :  { %v3332_v47 = vpop.eup %3331 }
0x2c0a   :  { %v3334_v48 = vpop.eup %3333 }
0x2c0b   :  { %v3336_v49 = vpop.eup %3335  ;;  %v3172_v51 = vpack.c.bf16 %v3334_v48, %v3332_v47 }
0x2c0c   :  { %v3338_v52 = vpop.eup %3337 }
0x2c0d   :  { %3173 = vmatpush3.bf16.msra.mxu0 %v3172_v51  ;;  %v3340_v58 = vpop.eup %3339  ;;  %v3175_v1 = vpack.c.bf16 %v3338_v52, %v3336_v49 }
0x2c0e   :  { %3174 = vmatprep.subr.bf16.mxu0 %v3470_v0  ;;  %v3342_v61 = vpop.eup %3341 }
0x2c0f   :  { %v3344_v62 = vpop.eup %3343  ;;  %v3178_v63 = vpack.c.bf16 %v3342_v61, %v3340_v58 }
0x2c10   :  { %v3346_v2 = vpop.eup %3345 }
0x2c11   :  { %3176 = vmatpush3.bf16.msra.mxu0 %v3175_v1  ;;  %v3181_v3 = vpack.c.bf16 %v3346_v2, %v3344_v62 }
0x2c12   :  { %3177 = vmatprep.subr.bf16.mxu0 %v3470_v0 }
0x2c15   :  { %3179 = vmatpush3.bf16.msra.mxu0 %v3178_v63 }
0x2c16   :  { %3180 = vmatprep.subr.bf16.mxu0 %v3470_v0 }
0x2c19   :  { %3182 = vmatpush3.bf16.msra.mxu0 %v3181_v3 }
0x2c1c   :  { %3049 = vmatmul.mubr.msk.f32.vlgmr.msra.gmra.mrb[36].mxu0 %vm2448_vm12, %v4006_v38 }
0x2c1d   :  { %3426 = shalt.err (!%p3423_p0)
}
0x2c1e   :  { %s3427_s3 = scalar_lea.hbm %s4158_s12, 256 }
0x2c1f   :  { %p3428_p1 = scmp.ne.s32.totalorder %s4158_s12, %s3427_s3  ;;  %p3431_p2 = scmp.lt.u32.totalorder %s3427_s3, %s4158_s12 }
0x2c21   :  { %p3433_p3 = pnand %p3431_p2, %p3428_p1 }
0x2c23   :  { %3436 = shalt.err (!%p3433_p3)
}
0x2c24   :  { %s3484_s18 = smov 128   ;;  %s3437_s4 = scalar_lea.vmem %s2561_s14, 256 }
0x2c25   :  { %2554 = dma.vmem_to_hbm [thread:$0]  %s2549_s29, 256, %s4158_s12, [#allocation7], %s3484_s18, %s3484_s18, %s3475_s8  }
0x2c26   :  { %p3438_p4 = scmp.ne.s32.totalorder %s2561_s14, %s3437_s4  ;;  %p3442_p5 = scmp.lt.s32.totalorder %s2561_s14, %s2561_s14 }
0x2c27   :  { %p3443_p6 = scmp.lt.s32.totalorder %s3437_s4, %s3437_s4 }
0x2c29   :  { %p3444_p7 = por %p3443_p6, %p3442_p5 }
0x2c2b   :  { %p3445_p8 = pnand %p3444_p7, %p3438_p4 }
0x2c2d   :  { %3448 = shalt.err (!%p3445_p8)
}
0x2c2e   :  { %s3449_s9 = scalar_lea.hbm %s4159_s13, 256 }
0x2c2f   :  { %p3450_p9 = scmp.ne.s32.totalorder %s4159_s13, %s3449_s9  ;;  %p3453_p10 = scmp.lt.u32.totalorder %s3449_s9, %s4159_s13 }
0x2c31   :  { %p3455_p11 = pnand %p3453_p10, %p3450_p9 }
0x2c33   :  { %3458 = shalt.err (!%p3455_p11)
}
0x2c34   :  { %2566 = dma.vmem_to_hbm [thread:$0]  %s2561_s14, 256, %s4159_s13, [#allocation13], %s3484_s18, %s3484_s18, %s3475_s8  }
0x2cef   :  { %v2518_v0 = vpop.f32.mrb[36].mxu0 }
0x2cf0   :  { %3347 = vlog2.f32 %v2518_v0  ;;  %v3050_v38 = vpop.f32.mrb[37].mxu0 }
0x2cfa   :  { %v3348_v8 = vpop.eup %3347 }
0x2cfb   :  { %v2523_v9 = vmul.f32 0.6931472, %v3348_v8 }
0x2cfd   :  { %v2524_v53 = vadd.f32 %v2523_v9, %v4057_v34 }
0x2cff   :  { %v2525_v37 = vsub.f32 %v4026_v55, %v2524_v53  ;;  %v2526_v12 = vsub.f32 %v4023_v50, %v2524_v53  ;;  %v2527_v59 = vsub.f32 %v4032_v10, %v2524_v53  ;;  %v2528_v36 = vsub.f32 %v4029_v7, %v2524_v53 }
0x2d00   :  { %v2529_v13 = vsub.f32 %v4020_v6, %v2524_v53  ;;  %v2530_v14 = vsub.f32 %v4017_v4, %v2524_v53  ;;  %v2531_v15 = vsub.f32 %v4044_v11, %v2524_v53  ;;  %v2532_v16 = vsub.f32 %v4038_v57, %v2524_v53 }
0x2d01   :  { %2533 = vst.msk [vmem:[%s4157_s11] sm:$0xff] %vm2356_vm11, %v2525_v37  ;;  %2534 = vst.msk [vmem:[%s4157_s11 + $0x8] sm:$0xff] %vm2356_vm11, %v2526_v12 }
0x2d02   :  { %2535 = vst.msk [vmem:[%s4157_s11 + $0x10] sm:$0xff] %vm2356_vm11, %v2527_v59  ;;  %2536 = vst.msk [vmem:[%s4157_s11 + $0x18] sm:$0xff] %vm2356_vm11, %v2528_v36 }
0x2d03   :  { %2537 = vst.msk [vmem:[%s4157_s11 + $0x20] sm:$0xff] %vm2356_vm11, %v2529_v13  ;;  %2538 = vst.msk [vmem:[%s4157_s11 + $0x28] sm:$0xff] %vm2356_vm11, %v2530_v14 }
0x2d04   :  { %2539 = vst.msk [vmem:[%s4157_s11 + $0x30] sm:$0xff] %vm2356_vm11, %v2531_v15  ;;  %2540 = vst.msk [vmem:[%s4157_s11 + $0x38] sm:$0xff] %vm2356_vm11, %v2532_v16 }
0x2d05   :  { %3463 = dma.done.wait [#allocation7], 256  }
0x2d06   :  { %3464 = vsyncadd [#allocation7], 4294967040 }
0x2d07   :  { %3465 = dma.done.wait [#allocation13], 256  }
0x2d08   :  { %3466 = vsyncadd [#allocation13], 4294967040 }
0x2d09   :  { %2575 = vsyncpa [#allocation6], 1 }
0x2d0a   :  { %2576 = vsyncpa [#allocation9], 1 }
0x2d0b   :  { %2577 = vsyncpa [#allocation7], 1 }
0x2d0c   :  { %2578 = vsyncpa [#allocation13], 1 }

</bundles_post_ra>
